<compile_context>
chip_gen: v5e
topology: v5e:2x2
jax: 0.10.0
libtpu: 0.0.40
codegen_flags: <defaults>
</compile_context>

<pallas_src>
import math

import numpy as np
import jax
import jax.numpy as jnp
from jax import lax
from jax.experimental import pallas as pl
from jax.experimental.pallas import tpu as pltpu

# ----------------------------- config (small) -----------------------------
VOCAB = 16
D_MODEL = 32
NHEAD = 4
DH = D_MODEL // NHEAD
NLAYERS = 2
FEATURE_DIM = 1
D_FF = 4 * D_MODEL          # GPT-2 MLP inner dim
MAX_LEN = 64
B = 2
S = 8
BS = B * S
EPS = 1e-5
NEG = -1e9
GELU_C = math.sqrt(2.0 / math.pi)
LANES = 128

# per-layer vector slab row indices (vecs: (NLAYERS, NVEC, 128))
V_LN1G, V_LN1B, V_BQ, V_BK, V_BV, V_BO, V_LN2G, V_LN2B, V_BFC, V_BPROJ = range(10)
NVEC = 10

# constants slab row offsets (cst: (NCST, 128)); every multi-row slice starts at
# a multiple of 8 and every lane slice starts at lane 0.
R_POSADD = 0            # (BS, D)      pe + wpe + feature_fc bias, tiled over batch
R_WTE = 16              # (VOCAB, D)   embedding table
R_HEADMASK = 32         # (NHEAD, D)   0/1 per-head column masks
R_ATTNMASK = 40         # (BS, BS)     additive block-diag(batch) + causal mask
R_AVG = 56              # (B, BS)      per-batch seq-mean matrix
R_WFEAT = 58            # (1, D)       feature_fc weight row
R_LNFG = 59             # (1, D)
R_LNFB = 60             # (1, D)
R_BFIN = 61             # (1, 128)     [b_out | 0 | 0]
R_WFIN = 64             # (D, 128)     [w_out | I_D | 0]
NCST = 96


# ----------------------------- in-kernel math -----------------------------
def _layernorm(x, g, b):
    # one-pass layernorm: var = E[x^2] - mu^2 (one fewer cross-lane reduction)
    mu = jnp.mean(x, axis=-1, keepdims=True)
    ms = jnp.mean(x * x, axis=-1, keepdims=True)
    return (x - mu) * lax.rsqrt(ms - mu * mu + EPS) * g + b


def _gelu_new(x):
    return 0.5 * x * (1.0 + jnp.tanh(GELU_C * (x + 0.044715 * x * x * x)))


# ----------------------------- fused kernel -----------------------------
def fused_kernel(ids_ref, feat_ref, wattn_ref, wfc_ref, wproj_ref,
                 vecs_ref, cst_ref, out_ref):
    f32 = jnp.float32

    def vrow(li, idx, width=D_MODEL):
        return vecs_ref[li, idx:idx + 1, 0:width]                    # (1, width)

    # ---- embedding lookup as one-hot matmul (MXU, no XLA gather) ----
    ids = ids_ref[...]                                               # (BS, 1) int32
    onehot = (ids == lax.broadcasted_iota(jnp.int32, (BS, VOCAB), 1)).astype(f32)
    wte = cst_ref[R_WTE:R_WTE + VOCAB, 0:D_MODEL]                    # (VOCAB, D)
    emb = jnp.dot(onehot, wte, preferred_element_type=f32)           # (BS, D)

    # ---- feature_fc (FEATURE_DIM == 1) as a broadcast multiply + pos table ----
    fe = feat_ref[...] * cst_ref[R_WFEAT:R_WFEAT + 1, 0:D_MODEL]     # (BS, D)
    x = emb + fe + cst_ref[R_POSADD:R_POSADD + BS, 0:D_MODEL]        # (BS, D)

    attn_bias = cst_ref[R_ATTNMASK:R_ATTNMASK + BS, 0:BS]            # (BS, BS)

    # ---- GPT-2 blocks: static unrolled layer loop, all weights VMEM-resident ----
    for li in range(NLAYERS):
        h1 = _layernorm(x, vrow(li, V_LN1G), vrow(li, V_LN1B))
        # separate q/k/v projections (no lane slicing of a fused qkv block);
        # 1/sqrt(dh) is pre-folded into wq / bq.
        q = jnp.dot(h1, wattn_ref[li, 0], preferred_element_type=f32) + vrow(li, V_BQ)
        k = jnp.dot(h1, wattn_ref[li, 1], preferred_element_type=f32) + vrow(li, V_BK)
        v = jnp.dot(h1, wattn_ref[li, 2], preferred_element_type=f32) + vrow(li, V_BV)

        ctx = jnp.zeros((BS, D_MODEL), f32)
        for hh in range(NHEAD):                                      # static head loop
            hm = cst_ref[R_HEADMASK + hh:R_HEADMASK + hh + 1, 0:D_MODEL]  # (1, D)
            # head selection via mask-multiply; contract over the full D
            sc = lax.dot_general(q * hm, k, (((1,), (1,)), ((), ())),
                                 preferred_element_type=f32)         # (BS, BS)
            sc = sc + attn_bias                                      # causal + batch-block
            sc = sc - jnp.max(sc, axis=-1, keepdims=True)
            p = jnp.exp(sc)
            p = p * pl.reciprocal(jnp.sum(p, axis=-1, keepdims=True), approx=True)
            # zero-padded per-head context lands in its natural D columns
            ctx = ctx + jnp.dot(p, v * hm, preferred_element_type=f32)

        # single output projection with the original wo
        x = x + jnp.dot(ctx, wattn_ref[li, 3], preferred_element_type=f32) + vrow(li, V_BO)

        h2 = _layernorm(x, vrow(li, V_LN2G), vrow(li, V_LN2B))
        hfc = jnp.dot(h2, wfc_ref[li], preferred_element_type=f32) \
            + vecs_ref[li, V_BFC:V_BFC + 1, :]                       # (BS, D_FF)
        hfc = _gelu_new(hfc)
        x = x + jnp.dot(hfc, wproj_ref[li], preferred_element_type=f32) + vrow(li, V_BPROJ)

    # ---- ln_f + per-batch mean over seq + fused [fc_out | identity] projection ----
    hf = _layernorm(x, cst_ref[R_LNFG:R_LNFG + 1, 0:D_MODEL],
                    cst_ref[R_LNFB:R_LNFB + 1, 0:D_MODEL])           # (BS, D)
    featB = jnp.dot(cst_ref[R_AVG:R_AVG + B, 0:BS], hf,
                    preferred_element_type=f32)                      # (B, D)
    # one lane-dense (B, 128) store: cols 0:2 = loc, cols 2:2+D = feature
    out_ref[...] = jnp.dot(featB, cst_ref[R_WFIN:R_WFIN + D_MODEL, :],
                           preferred_element_type=f32) \
                 + cst_ref[R_BFIN:R_BFIN + 1, :]


# ----------------------------- one-time weight packing (host side) -----------------------------
def pack_params(params):
    """Pack all model parameters / constants into 5 lane-friendly device arrays.
    Runs ONCE at init — no per-call XLA stacking/reshaping."""
    scale = 1.0 / math.sqrt(DH)
    tonp = lambda a: np.asarray(a, dtype=np.float32)

    wattn = np.zeros((NLAYERS, 4, D_MODEL, D_MODEL), np.float32)   # wq*s, wk, wv, wo
    wfc = np.zeros((NLAYERS, D_MODEL, D_FF), np.float32)
    wproj = np.zeros((NLAYERS, D_FF, D_MODEL), np.float32)
    vecs = np.zeros((NLAYERS, NVEC, LANES), np.float32)

    for li, L in enumerate(params["layers"]):
        wqkv = tonp(L["wqkv"])
        bqkv = tonp(L["bqkv"]).reshape(-1)
        wattn[li, 0] = wqkv[:, 0:D_MODEL] * scale
        wattn[li, 1] = wqkv[:, D_MODEL:2 * D_MODEL]
        wattn[li, 2] = wqkv[:, 2 * D_MODEL:3 * D_MODEL]
        wattn[li, 3] = tonp(L["wo"])
        wfc[li] = tonp(L["wfc"])
        wproj[li] = tonp(L["wproj"])
        vecs[li, V_LN1G, :D_MODEL] = tonp(L["ln1g"]).reshape(-1)
        vecs[li, V_LN1B, :D_MODEL] = tonp(L["ln1b"]).reshape(-1)
        vecs[li, V_BQ, :D_MODEL] = bqkv[0:D_MODEL] * scale
        vecs[li, V_BK, :D_MODEL] = bqkv[D_MODEL:2 * D_MODEL]
        vecs[li, V_BV, :D_MODEL] = bqkv[2 * D_MODEL:]
        vecs[li, V_BO, :D_MODEL] = tonp(L["bo"]).reshape(-1)
        vecs[li, V_LN2G, :D_MODEL] = tonp(L["ln2g"]).reshape(-1)
        vecs[li, V_LN2B, :D_MODEL] = tonp(L["ln2b"]).reshape(-1)
        vecs[li, V_BFC, :D_FF] = tonp(L["bfc"]).reshape(-1)
        vecs[li, V_BPROJ, :D_MODEL] = tonp(L["bproj"]).reshape(-1)

    cst = np.zeros((NCST, LANES), np.float32)
    # pe + wpe + feature_fc bias folded into one positionwise add table
    posadd = (tonp(params["pe"])[:S] + tonp(params["wpe"])[:S]
              + tonp(params["b_feat"]).reshape(1, -1))
    cst[R_POSADD:R_POSADD + BS, :D_MODEL] = np.tile(posadd, (B, 1))
    cst[R_WTE:R_WTE + VOCAB, :D_MODEL] = tonp(params["wte"])
    for hh in range(NHEAD):
        cst[R_HEADMASK + hh, hh * DH:(hh + 1) * DH] = 1.0
    # additive attention mask: same batch AND causal -> 0, else -1e9
    qi = np.arange(BS)[:, None]
    kj = np.arange(BS)[None, :]
    allowed = (qi // S == kj // S) & ((kj % S) <= (qi % S))
    cst[R_ATTNMASK:R_ATTNMASK + BS, :BS] = np.where(allowed, 0.0, NEG)
    for b in range(B):
        cst[R_AVG + b, b * S:(b + 1) * S] = 1.0 / S
    cst[R_WFEAT, :D_MODEL] = tonp(params["w_feat"]).reshape(-1)
    cst[R_LNFG, :D_MODEL] = tonp(params["lnfg"]).reshape(-1)
    cst[R_LNFB, :D_MODEL] = tonp(params["lnfb"]).reshape(-1)
    cst[R_BFIN, 0:2] = tonp(params["b_out"]).reshape(-1)
    # fused final projection: cols 0:2 = fc_out weight, cols 2:2+D = identity
    cst[R_WFIN:R_WFIN + D_MODEL, 0:2] = tonp(params["w_out"])
    cst[R_WFIN:R_WFIN + D_MODEL, 2:2 + D_MODEL] = np.eye(D_MODEL, dtype=np.float32)

    dev = jnp.asarray
    return (dev(wattn), dev(wfc), dev(wproj), dev(vecs), dev(cst))


# ----------------------------- forward (single pallas_call) -----------------------------
@jax.jit
def forward(id_input, feature_input, packed):
    Bv, Sv = id_input.shape
    ids = id_input.reshape(Bv * Sv, 1).astype(jnp.int32)
    feat = jnp.transpose(feature_input, (0, 2, 1)).reshape(Bv * Sv, FEATURE_DIM)

    vmem = pl.BlockSpec(memory_space=pltpu.MemorySpace.VMEM)
    out = pl.pallas_call(
        fused_kernel,
        out_shape=jax.ShapeDtypeStruct((Bv, LANES), jnp.float32),
        in_specs=[vmem] * 7,
        out_specs=vmem,
    )(ids, feat, *packed)

    loc = out[:, 0:2]
    feature = out[:, 2:2 + D_MODEL]
    return loc, feature, None                                        # will_recover_rssi=False


# ----------------------------- pure-JAX reference -----------------------------
def _layernorm_ref(x, g, b):
    mu = jnp.mean(x, axis=-1, keepdims=True)
    var = jnp.mean((x - mu) ** 2, axis=-1, keepdims=True)
    return (x - mu) / jnp.sqrt(var + EPS) * g + b


def ref_forward(id_input, feature_input, params):
    dh = D_MODEL // NHEAD
    emb = params["wte"][id_input]
    feat_t = jnp.transpose(feature_input, (0, 2, 1))
    fe = feat_t @ params["w_feat"] + params["b_feat"]
    fe = fe + params["pe"][None, :S]
    h = emb + fe + params["wpe"][None, :S]
    mask = jnp.tril(jnp.ones((S, S), bool))
    for L in params["layers"]:
        x = h
        hn = _layernorm_ref(x, L["ln1g"], L["ln1b"])
        qkv = hn @ L["wqkv"] + L["bqkv"]
        q, k, v = jnp.split(qkv, 3, axis=-1)
        hs = lambda t: t.reshape(x.shape[0], S, NHEAD, dh).transpose(0, 2, 1, 3)
        q, k, v = hs(q), hs(k), hs(v)
        sc = jnp.einsum("bhqd,bhkd->bhqk", q, k, precision="highest") / math.sqrt(dh)
        sc = jnp.where(mask, sc, -1e9)
        p = jax.nn.softmax(sc, axis=-1)
        ctx = jnp.einsum("bhqk,bhkd->bhqd", p, v, precision="highest")
        ctx = ctx.transpose(0, 2, 1, 3).reshape(x.shape[0], S, D_MODEL)
        x = x + ctx @ L["wo"] + L["bo"]
        h2 = _layernorm_ref(x, L["ln2g"], L["ln2b"])
        h = x + _gelu_new(h2 @ L["wfc"] + L["bfc"]) @ L["wproj"] + L["bproj"]
    h = _layernorm_ref(h, params["lnfg"], params["lnfb"])
    feat = jnp.mean(h, axis=1)
    loc = feat @ params["w_out"] + params["b_out"]
    return loc, feat, None


# ----------------------------- deterministic parameter init -----------------------------
def init_params(key):
    keys = iter(jax.random.split(key, 64))
    nrm = lambda shape, s=0.02: (s * jax.random.normal(next(keys), shape)).astype(jnp.float32)

    # sin/cos PositionalEncoding table
    position = jnp.arange(MAX_LEN, dtype=jnp.float32)[:, None]
    div_term = jnp.exp(jnp.arange(0, D_MODEL, 2, dtype=jnp.float32) * (-math.log(10000.0) / D_MODEL))
    pe = jnp.zeros((MAX_LEN, D_MODEL), jnp.float32)
    pe = pe.at[:, 0::2].set(jnp.sin(position * div_term))
    pe = pe.at[:, 1::2].set(jnp.cos(position * div_term))

    layers = []
    for _ in range(NLAYERS):
        layers.append(dict(
            ln1g=jnp.ones((1, D_MODEL), jnp.float32), ln1b=jnp.zeros((1, D_MODEL), jnp.float32),
            wqkv=nrm((D_MODEL, 3 * D_MODEL)), bqkv=jnp.zeros((1, 3 * D_MODEL), jnp.float32),
            wo=nrm((D_MODEL, D_MODEL)), bo=jnp.zeros((1, D_MODEL), jnp.float32),
            ln2g=jnp.ones((1, D_MODEL), jnp.float32), ln2b=jnp.zeros((1, D_MODEL), jnp.float32),
            wfc=nrm((D_MODEL, D_FF)), bfc=jnp.zeros((1, D_FF), jnp.float32),
            wproj=nrm((D_FF, D_MODEL)), bproj=jnp.zeros((1, D_MODEL), jnp.float32),
        ))

    return dict(
        wte=nrm((VOCAB, D_MODEL), 1.0),              # nn.Embedding(vocab_size, d_model)
        w_feat=nrm((FEATURE_DIM, D_MODEL), 0.5),     # feature_fc
        b_feat=nrm((1, D_MODEL), 0.1),
        pe=pe,
        wpe=nrm((MAX_LEN, D_MODEL)),                 # GPT2 learned position embedding
        layers=layers,
        lnfg=jnp.ones((1, D_MODEL), jnp.float32), lnfb=jnp.zeros((1, D_MODEL), jnp.float32),
        w_out=nrm((D_MODEL, 2), 0.5),                # fc_out
        b_out=nrm((1, 2), 0.1),
    )


# ----------------------------- main -----------------------------
if __name__ == "__main__":
    key = jax.random.PRNGKey(0)
    k_p, k_id, k_feat = jax.random.split(key, 3)
    params = init_params(k_p)
    packed = pack_params(params)          # one-time weight prep (hoisted out of forward)

    id_input = jax.random.randint(k_id, (B, S), 0, VOCAB, dtype=jnp.int32)
    feature_input = jax.random.normal(k_feat, (B, FEATURE_DIM, S), jnp.float32)

    loc, feature, rec = forward(id_input, feature_input, packed)
    jax.block_until_ready((loc, feature))

    loc_r, feat_r, _ = ref_forward(id_input, feature_input, params)
    assert loc.shape == (B, 2) and feature.shape == (B, D_MODEL) and rec is None
    assert jnp.allclose(loc, loc_r, atol=2e-3, rtol=2e-3), "loc mismatch vs reference"
    assert jnp.allclose(feature, feat_r, atol=2e-3, rtol=2e-3), "feature mismatch vs reference"

    print("KERNEL_OK")
</pallas_src>

<mosaic_0001>
module attributes {stable_mosaic.version = 11 : i64} {
  func.func @fused_kernel(%arg0: memref<16x1xi32, #tpu.memory_space<vmem>>, %arg1: memref<16x1xf32, #tpu.memory_space<vmem>>, %arg2: memref<2x4x32x32xf32, #tpu.memory_space<vmem>>, %arg3: memref<2x32x128xf32, #tpu.memory_space<vmem>>, %arg4: memref<2x128x32xf32, #tpu.memory_space<vmem>>, %arg5: memref<2x10x128xf32, #tpu.memory_space<vmem>>, %arg6: memref<96x128xf32, #tpu.memory_space<vmem>>, %arg7: memref<2x128xf32, #tpu.memory_space<vmem>>) attributes {dimension_semantics = [], scalar_prefetch = 0 : i64, scratch_operands = 0 : i64, tpu.core_type = #tpu.core_type<tc>} {
    %c0 = arith.constant 0 : index
    %c0_0 = arith.constant 0 : index
    %0 = vector.load %arg0[%c0, %c0_0] : memref<16x1xi32, #tpu.memory_space<vmem>>, vector<16x1xi32>
    %1 = tpu.iota {dimensions = array<i32: 1>} : vector<16x16xi32>
    %2 = vector.broadcast %0 : vector<16x1xi32> to vector<16x16xi32>
    %3 = arith.cmpi eq, %2, %1 : vector<16x16xi32>
    %4 = arith.extui %3 : vector<16x16xi1> to vector<16x16xi32>
    %5 = arith.sitofp %4 : vector<16x16xi32> to vector<16x16xf32>
    %c16 = arith.constant 16 : index
    %c0_1 = arith.constant 0 : index
    %6 = vector.load %arg6[%c16, %c0_1] : memref<96x128xf32, #tpu.memory_space<vmem>>, vector<16x32xf32>
    %cst = arith.constant dense<0.000000e+00> : vector<16x32xf32>
    %7 = tpu.matmul %5, %6, %cst {dimension_numbers = #tpu.dot_dimension_numbers<[1], [0], [0], [1], [0, 0, 1, 1], [], []>} : vector<16x16xf32>, vector<16x32xf32>, vector<16x32xf32> -> vector<16x32xf32>
    %c0_2 = arith.constant 0 : index
    %c0_3 = arith.constant 0 : index
    %8 = vector.load %arg1[%c0_2, %c0_3] : memref<16x1xf32, #tpu.memory_space<vmem>>, vector<16x1xf32>
    %c58 = arith.constant 58 : index
    %c0_4 = arith.constant 0 : index
    %9 = vector.load %arg6[%c58, %c0_4] : memref<96x128xf32, #tpu.memory_space<vmem>>, vector<1x32xf32>
    %10 = vector.broadcast %8 : vector<16x1xf32> to vector<16x32xf32>
    %11 = vector.broadcast %9 : vector<1x32xf32> to vector<16x32xf32>
    %12 = arith.mulf %10, %11 : vector<16x32xf32>
    %13 = arith.addf %7, %12 : vector<16x32xf32>
    %c0_5 = arith.constant 0 : index
    %c0_6 = arith.constant 0 : index
    %14 = vector.load %arg6[%c0_5, %c0_6] : memref<96x128xf32, #tpu.memory_space<vmem>>, vector<16x32xf32>
    %15 = arith.addf %13, %14 : vector<16x32xf32>
    %c40 = arith.constant 40 : index
    %c0_7 = arith.constant 0 : index
    %16 = vector.load %arg6[%c40, %c0_7] : memref<96x128xf32, #tpu.memory_space<vmem>>, vector<16x16xf32>
    %c0_8 = arith.constant 0 : index
    %c0_9 = arith.constant 0 : index
    %c0_10 = arith.constant 0 : index
    %17 = vector.load %arg5[%c0_8, %c0_9, %c0_10] : memref<2x10x128xf32, #tpu.memory_space<vmem>>, vector<1x1x32xf32>
    %18 = vector.shape_cast %17 : vector<1x1x32xf32> to vector<1x32xf32>
    %c0_11 = arith.constant 0 : index
    %c1 = arith.constant 1 : index
    %c0_12 = arith.constant 0 : index
    %19 = vector.load %arg5[%c0_11, %c1, %c0_12] : memref<2x10x128xf32, #tpu.memory_space<vmem>>, vector<1x1x32xf32>
    %20 = vector.shape_cast %19 : vector<1x1x32xf32> to vector<1x32xf32>
    %cst_13 = arith.constant dense<0.000000e+00> : vector<16xf32>
    %21 = vector.multi_reduction <add>, %15, %cst_13 [1] : vector<16x32xf32> to vector<16xf32>
    %22 = vector.shape_cast %21 : vector<16xf32> to vector<16x1xf32>
    %cst_14 = arith.constant 3.200000e+01 : f32
    %23 = vector.broadcast %cst_14 : f32 to vector<16x1xf32>
    %24 = arith.divf %22, %23 : vector<16x1xf32>
    %25 = arith.mulf %15, %15 : vector<16x32xf32>
    %cst_15 = arith.constant dense<0.000000e+00> : vector<16xf32>
    %26 = vector.multi_reduction <add>, %25, %cst_15 [1] : vector<16x32xf32> to vector<16xf32>
    %27 = vector.shape_cast %26 : vector<16xf32> to vector<16x1xf32>
    %cst_16 = arith.constant 3.200000e+01 : f32
    %28 = vector.broadcast %cst_16 : f32 to vector<16x1xf32>
    %29 = arith.divf %27, %28 : vector<16x1xf32>
    %30 = vector.broadcast %24 : vector<16x1xf32> to vector<16x32xf32>
    %31 = arith.subf %15, %30 : vector<16x32xf32>
    %32 = arith.mulf %24, %24 : vector<16x1xf32>
    %33 = arith.subf %29, %32 : vector<16x1xf32>
    %cst_17 = arith.constant 9.99999974E-6 : f32
    %34 = vector.broadcast %cst_17 : f32 to vector<16x1xf32>
    %35 = arith.addf %33, %34 : vector<16x1xf32>
    %36 = math.rsqrt %35 : vector<16x1xf32>
    %37 = vector.broadcast %36 : vector<16x1xf32> to vector<16x32xf32>
    %38 = arith.mulf %31, %37 : vector<16x32xf32>
    %39 = vector.broadcast %18 : vector<1x32xf32> to vector<16x32xf32>
    %40 = arith.mulf %38, %39 : vector<16x32xf32>
    %41 = vector.broadcast %20 : vector<1x32xf32> to vector<16x32xf32>
    %42 = arith.addf %40, %41 : vector<16x32xf32>
    %c0_18 = arith.constant 0 : index
    %c0_19 = arith.constant 0 : index
    %c0_20 = arith.constant 0 : index
    %c0_21 = arith.constant 0 : index
    %43 = vector.load %arg2[%c0_18, %c0_19, %c0_20, %c0_21] : memref<2x4x32x32xf32, #tpu.memory_space<vmem>>, vector<1x1x32x32xf32>
    %44 = vector.shape_cast %43 : vector<1x1x32x32xf32> to vector<32x32xf32>
    %cst_22 = arith.constant dense<0.000000e+00> : vector<16x32xf32>
    %45 = tpu.matmul %42, %44, %cst_22 {dimension_numbers = #tpu.dot_dimension_numbers<[1], [0], [0], [1], [0, 0, 1, 1], [], []>} : vector<16x32xf32>, vector<32x32xf32>, vector<16x32xf32> -> vector<16x32xf32>
    %c0_23 = arith.constant 0 : index
    %c2 = arith.constant 2 : index
    %c0_24 = arith.constant 0 : index
    %46 = vector.load %arg5[%c0_23, %c2, %c0_24] : memref<2x10x128xf32, #tpu.memory_space<vmem>>, vector<1x1x32xf32>
    %47 = vector.shape_cast %46 : vector<1x1x32xf32> to vector<1x32xf32>
    %48 = vector.broadcast %47 : vector<1x32xf32> to vector<16x32xf32>
    %49 = arith.addf %45, %48 : vector<16x32xf32>
    %c0_25 = arith.constant 0 : index
    %c1_26 = arith.constant 1 : index
    %c0_27 = arith.constant 0 : index
    %c0_28 = arith.constant 0 : index
    %50 = vector.load %arg2[%c0_25, %c1_26, %c0_27, %c0_28] : memref<2x4x32x32xf32, #tpu.memory_space<vmem>>, vector<1x1x32x32xf32>
    %51 = vector.shape_cast %50 : vector<1x1x32x32xf32> to vector<32x32xf32>
    %cst_29 = arith.constant dense<0.000000e+00> : vector<16x32xf32>
    %52 = tpu.matmul %42, %51, %cst_29 {dimension_numbers = #tpu.dot_dimension_numbers<[1], [0], [0], [1], [0, 0, 1, 1], [], []>} : vector<16x32xf32>, vector<32x32xf32>, vector<16x32xf32> -> vector<16x32xf32>
    %c0_30 = arith.constant 0 : index
    %c3 = arith.constant 3 : index
    %c0_31 = arith.constant 0 : index
    %53 = vector.load %arg5[%c0_30, %c3, %c0_31] : memref<2x10x128xf32, #tpu.memory_space<vmem>>, vector<1x1x32xf32>
    %54 = vector.shape_cast %53 : vector<1x1x32xf32> to vector<1x32xf32>
    %55 = vector.broadcast %54 : vector<1x32xf32> to vector<16x32xf32>
    %56 = arith.addf %52, %55 : vector<16x32xf32>
    %c0_32 = arith.constant 0 : index
    %c2_33 = arith.constant 2 : index
    %c0_34 = arith.constant 0 : index
    %c0_35 = arith.constant 0 : index
    %57 = vector.load %arg2[%c0_32, %c2_33, %c0_34, %c0_35] : memref<2x4x32x32xf32, #tpu.memory_space<vmem>>, vector<1x1x32x32xf32>
    %58 = vector.shape_cast %57 : vector<1x1x32x32xf32> to vector<32x32xf32>
    %cst_36 = arith.constant dense<0.000000e+00> : vector<16x32xf32>
    %59 = tpu.matmul %42, %58, %cst_36 {dimension_numbers = #tpu.dot_dimension_numbers<[1], [0], [0], [1], [0, 0, 1, 1], [], []>} : vector<16x32xf32>, vector<32x32xf32>, vector<16x32xf32> -> vector<16x32xf32>
    %c0_37 = arith.constant 0 : index
    %c4 = arith.constant 4 : index
    %c0_38 = arith.constant 0 : index
    %60 = vector.load %arg5[%c0_37, %c4, %c0_38] : memref<2x10x128xf32, #tpu.memory_space<vmem>>, vector<1x1x32xf32>
    %61 = vector.shape_cast %60 : vector<1x1x32xf32> to vector<1x32xf32>
    %62 = vector.broadcast %61 : vector<1x32xf32> to vector<16x32xf32>
    %63 = arith.addf %59, %62 : vector<16x32xf32>
    %cst_39 = arith.constant 0.000000e+00 : f32
    %64 = vector.broadcast %cst_39 : f32 to vector<16x32xf32>
    %c32 = arith.constant 32 : index
    %c0_40 = arith.constant 0 : index
    %65 = vector.load %arg6[%c32, %c0_40] : memref<96x128xf32, #tpu.memory_space<vmem>>, vector<1x32xf32>
    %66 = vector.broadcast %65 : vector<1x32xf32> to vector<16x32xf32>
    %67 = arith.mulf %49, %66 : vector<16x32xf32>
    %cst_41 = arith.constant dense<0.000000e+00> : vector<16x16xf32>
    %68 = tpu.matmul %67, %56, %cst_41 {dimension_numbers = #tpu.dot_dimension_numbers<[1], [1], [0], [0], [0, 0, 1, 0], [], []>} : vector<16x32xf32>, vector<16x32xf32>, vector<16x16xf32> -> vector<16x16xf32>
    %69 = arith.addf %68, %16 : vector<16x16xf32>
    %cst_42 = arith.constant dense<0xFF800000> : vector<16xf32>
    %70 = vector.multi_reduction <maximumf>, %69, %cst_42 [1] : vector<16x16xf32> to vector<16xf32>
    %71 = vector.shape_cast %70 : vector<16xf32> to vector<16x1xf32>
    %72 = vector.broadcast %71 : vector<16x1xf32> to vector<16x16xf32>
    %73 = arith.subf %69, %72 : vector<16x16xf32>
    %74 = math.exp %73 : vector<16x16xf32>
    %cst_43 = arith.constant dense<0.000000e+00> : vector<16xf32>
    %75 = vector.multi_reduction <add>, %74, %cst_43 [1] : vector<16x16xf32> to vector<16xf32>
    %76 = vector.shape_cast %75 : vector<16xf32> to vector<16x1xf32>
    %77 = tpu.reciprocal %76 {approx = true} : vector<16x1xf32> -> vector<16x1xf32>
    %78 = vector.broadcast %77 : vector<16x1xf32> to vector<16x16xf32>
    %79 = arith.mulf %74, %78 : vector<16x16xf32>
    %80 = vector.broadcast %65 : vector<1x32xf32> to vector<16x32xf32>
    %81 = arith.mulf %63, %80 : vector<16x32xf32>
    %cst_44 = arith.constant dense<0.000000e+00> : vector<16x32xf32>
    %82 = tpu.matmul %79, %81, %cst_44 {dimension_numbers = #tpu.dot_dimension_numbers<[1], [0], [0], [1], [0, 0, 1, 1], [], []>} : vector<16x16xf32>, vector<16x32xf32>, vector<16x32xf32> -> vector<16x32xf32>
    %83 = arith.addf %64, %82 : vector<16x32xf32>
    %c33 = arith.constant 33 : index
    %c0_45 = arith.constant 0 : index
    %84 = vector.load %arg6[%c33, %c0_45] : memref<96x128xf32, #tpu.memory_space<vmem>>, vector<1x32xf32>
    %85 = vector.broadcast %84 : vector<1x32xf32> to vector<16x32xf32>
    %86 = arith.mulf %49, %85 : vector<16x32xf32>
    %cst_46 = arith.constant dense<0.000000e+00> : vector<16x16xf32>
    %87 = tpu.matmul %86, %56, %cst_46 {dimension_numbers = #tpu.dot_dimension_numbers<[1], [1], [0], [0], [0, 0, 1, 0], [], []>} : vector<16x32xf32>, vector<16x32xf32>, vector<16x16xf32> -> vector<16x16xf32>
    %88 = arith.addf %87, %16 : vector<16x16xf32>
    %cst_47 = arith.constant dense<0xFF800000> : vector<16xf32>
    %89 = vector.multi_reduction <maximumf>, %88, %cst_47 [1] : vector<16x16xf32> to vector<16xf32>
    %90 = vector.shape_cast %89 : vector<16xf32> to vector<16x1xf32>
    %91 = vector.broadcast %90 : vector<16x1xf32> to vector<16x16xf32>
    %92 = arith.subf %88, %91 : vector<16x16xf32>
    %93 = math.exp %92 : vector<16x16xf32>
    %cst_48 = arith.constant dense<0.000000e+00> : vector<16xf32>
    %94 = vector.multi_reduction <add>, %93, %cst_48 [1] : vector<16x16xf32> to vector<16xf32>
    %95 = vector.shape_cast %94 : vector<16xf32> to vector<16x1xf32>
    %96 = tpu.reciprocal %95 {approx = true} : vector<16x1xf32> -> vector<16x1xf32>
    %97 = vector.broadcast %96 : vector<16x1xf32> to vector<16x16xf32>
    %98 = arith.mulf %93, %97 : vector<16x16xf32>
    %99 = vector.broadcast %84 : vector<1x32xf32> to vector<16x32xf32>
    %100 = arith.mulf %63, %99 : vector<16x32xf32>
    %cst_49 = arith.constant dense<0.000000e+00> : vector<16x32xf32>
    %101 = tpu.matmul %98, %100, %cst_49 {dimension_numbers = #tpu.dot_dimension_numbers<[1], [0], [0], [1], [0, 0, 1, 1], [], []>} : vector<16x16xf32>, vector<16x32xf32>, vector<16x32xf32> -> vector<16x32xf32>
    %102 = arith.addf %83, %101 : vector<16x32xf32>
    %c34 = arith.constant 34 : index
    %c0_50 = arith.constant 0 : index
    %103 = vector.load %arg6[%c34, %c0_50] : memref<96x128xf32, #tpu.memory_space<vmem>>, vector<1x32xf32>
    %104 = vector.broadcast %103 : vector<1x32xf32> to vector<16x32xf32>
    %105 = arith.mulf %49, %104 : vector<16x32xf32>
    %cst_51 = arith.constant dense<0.000000e+00> : vector<16x16xf32>
    %106 = tpu.matmul %105, %56, %cst_51 {dimension_numbers = #tpu.dot_dimension_numbers<[1], [1], [0], [0], [0, 0, 1, 0], [], []>} : vector<16x32xf32>, vector<16x32xf32>, vector<16x16xf32> -> vector<16x16xf32>
    %107 = arith.addf %106, %16 : vector<16x16xf32>
    %cst_52 = arith.constant dense<0xFF800000> : vector<16xf32>
    %108 = vector.multi_reduction <maximumf>, %107, %cst_52 [1] : vector<16x16xf32> to vector<16xf32>
    %109 = vector.shape_cast %108 : vector<16xf32> to vector<16x1xf32>
    %110 = vector.broadcast %109 : vector<16x1xf32> to vector<16x16xf32>
    %111 = arith.subf %107, %110 : vector<16x16xf32>
    %112 = math.exp %111 : vector<16x16xf32>
    %cst_53 = arith.constant dense<0.000000e+00> : vector<16xf32>
    %113 = vector.multi_reduction <add>, %112, %cst_53 [1] : vector<16x16xf32> to vector<16xf32>
    %114 = vector.shape_cast %113 : vector<16xf32> to vector<16x1xf32>
    %115 = tpu.reciprocal %114 {approx = true} : vector<16x1xf32> -> vector<16x1xf32>
    %116 = vector.broadcast %115 : vector<16x1xf32> to vector<16x16xf32>
    %117 = arith.mulf %112, %116 : vector<16x16xf32>
    %118 = vector.broadcast %103 : vector<1x32xf32> to vector<16x32xf32>
    %119 = arith.mulf %63, %118 : vector<16x32xf32>
    %cst_54 = arith.constant dense<0.000000e+00> : vector<16x32xf32>
    %120 = tpu.matmul %117, %119, %cst_54 {dimension_numbers = #tpu.dot_dimension_numbers<[1], [0], [0], [1], [0, 0, 1, 1], [], []>} : vector<16x16xf32>, vector<16x32xf32>, vector<16x32xf32> -> vector<16x32xf32>
    %121 = arith.addf %102, %120 : vector<16x32xf32>
    %c35 = arith.constant 35 : index
    %c0_55 = arith.constant 0 : index
    %122 = vector.load %arg6[%c35, %c0_55] : memref<96x128xf32, #tpu.memory_space<vmem>>, vector<1x32xf32>
    %123 = vector.broadcast %122 : vector<1x32xf32> to vector<16x32xf32>
    %124 = arith.mulf %49, %123 : vector<16x32xf32>
    %cst_56 = arith.constant dense<0.000000e+00> : vector<16x16xf32>
    %125 = tpu.matmul %124, %56, %cst_56 {dimension_numbers = #tpu.dot_dimension_numbers<[1], [1], [0], [0], [0, 0, 1, 0], [], []>} : vector<16x32xf32>, vector<16x32xf32>, vector<16x16xf32> -> vector<16x16xf32>
    %126 = arith.addf %125, %16 : vector<16x16xf32>
    %cst_57 = arith.constant dense<0xFF800000> : vector<16xf32>
    %127 = vector.multi_reduction <maximumf>, %126, %cst_57 [1] : vector<16x16xf32> to vector<16xf32>
    %128 = vector.shape_cast %127 : vector<16xf32> to vector<16x1xf32>
    %129 = vector.broadcast %128 : vector<16x1xf32> to vector<16x16xf32>
    %130 = arith.subf %126, %129 : vector<16x16xf32>
    %131 = math.exp %130 : vector<16x16xf32>
    %cst_58 = arith.constant dense<0.000000e+00> : vector<16xf32>
    %132 = vector.multi_reduction <add>, %131, %cst_58 [1] : vector<16x16xf32> to vector<16xf32>
    %133 = vector.shape_cast %132 : vector<16xf32> to vector<16x1xf32>
    %134 = tpu.reciprocal %133 {approx = true} : vector<16x1xf32> -> vector<16x1xf32>
    %135 = vector.broadcast %134 : vector<16x1xf32> to vector<16x16xf32>
    %136 = arith.mulf %131, %135 : vector<16x16xf32>
    %137 = vector.broadcast %122 : vector<1x32xf32> to vector<16x32xf32>
    %138 = arith.mulf %63, %137 : vector<16x32xf32>
    %cst_59 = arith.constant dense<0.000000e+00> : vector<16x32xf32>
    %139 = tpu.matmul %136, %138, %cst_59 {dimension_numbers = #tpu.dot_dimension_numbers<[1], [0], [0], [1], [0, 0, 1, 1], [], []>} : vector<16x16xf32>, vector<16x32xf32>, vector<16x32xf32> -> vector<16x32xf32>
    %140 = arith.addf %121, %139 : vector<16x32xf32>
    %c0_60 = arith.constant 0 : index
    %c3_61 = arith.constant 3 : index
    %c0_62 = arith.constant 0 : index
    %c0_63 = arith.constant 0 : index
    %141 = vector.load %arg2[%c0_60, %c3_61, %c0_62, %c0_63] : memref<2x4x32x32xf32, #tpu.memory_space<vmem>>, vector<1x1x32x32xf32>
    %142 = vector.shape_cast %141 : vector<1x1x32x32xf32> to vector<32x32xf32>
    %cst_64 = arith.constant dense<0.000000e+00> : vector<16x32xf32>
    %143 = tpu.matmul %140, %142, %cst_64 {dimension_numbers = #tpu.dot_dimension_numbers<[1], [0], [0], [1], [0, 0, 1, 1], [], []>} : vector<16x32xf32>, vector<32x32xf32>, vector<16x32xf32> -> vector<16x32xf32>
    %144 = arith.addf %15, %143 : vector<16x32xf32>
    %c0_65 = arith.constant 0 : index
    %c5 = arith.constant 5 : index
    %c0_66 = arith.constant 0 : index
    %145 = vector.load %arg5[%c0_65, %c5, %c0_66] : memref<2x10x128xf32, #tpu.memory_space<vmem>>, vector<1x1x32xf32>
    %146 = vector.shape_cast %145 : vector<1x1x32xf32> to vector<1x32xf32>
    %147 = vector.broadcast %146 : vector<1x32xf32> to vector<16x32xf32>
    %148 = arith.addf %144, %147 : vector<16x32xf32>
    %c0_67 = arith.constant 0 : index
    %c6 = arith.constant 6 : index
    %c0_68 = arith.constant 0 : index
    %149 = vector.load %arg5[%c0_67, %c6, %c0_68] : memref<2x10x128xf32, #tpu.memory_space<vmem>>, vector<1x1x32xf32>
    %150 = vector.shape_cast %149 : vector<1x1x32xf32> to vector<1x32xf32>
    %c0_69 = arith.constant 0 : index
    %c7 = arith.constant 7 : index
    %c0_70 = arith.constant 0 : index
    %151 = vector.load %arg5[%c0_69, %c7, %c0_70] : memref<2x10x128xf32, #tpu.memory_space<vmem>>, vector<1x1x32xf32>
    %152 = vector.shape_cast %151 : vector<1x1x32xf32> to vector<1x32xf32>
    %cst_71 = arith.constant dense<0.000000e+00> : vector<16xf32>
    %153 = vector.multi_reduction <add>, %148, %cst_71 [1] : vector<16x32xf32> to vector<16xf32>
    %154 = vector.shape_cast %153 : vector<16xf32> to vector<16x1xf32>
    %cst_72 = arith.constant 3.200000e+01 : f32
    %155 = vector.broadcast %cst_72 : f32 to vector<16x1xf32>
    %156 = arith.divf %154, %155 : vector<16x1xf32>
    %157 = arith.mulf %148, %148 : vector<16x32xf32>
    %cst_73 = arith.constant dense<0.000000e+00> : vector<16xf32>
    %158 = vector.multi_reduction <add>, %157, %cst_73 [1] : vector<16x32xf32> to vector<16xf32>
    %159 = vector.shape_cast %158 : vector<16xf32> to vector<16x1xf32>
    %cst_74 = arith.constant 3.200000e+01 : f32
    %160 = vector.broadcast %cst_74 : f32 to vector<16x1xf32>
    %161 = arith.divf %159, %160 : vector<16x1xf32>
    %162 = vector.broadcast %156 : vector<16x1xf32> to vector<16x32xf32>
    %163 = arith.subf %148, %162 : vector<16x32xf32>
    %164 = arith.mulf %156, %156 : vector<16x1xf32>
    %165 = arith.subf %161, %164 : vector<16x1xf32>
    %cst_75 = arith.constant 9.99999974E-6 : f32
    %166 = vector.broadcast %cst_75 : f32 to vector<16x1xf32>
    %167 = arith.addf %165, %166 : vector<16x1xf32>
    %168 = math.rsqrt %167 : vector<16x1xf32>
    %169 = vector.broadcast %168 : vector<16x1xf32> to vector<16x32xf32>
    %170 = arith.mulf %163, %169 : vector<16x32xf32>
    %171 = vector.broadcast %150 : vector<1x32xf32> to vector<16x32xf32>
    %172 = arith.mulf %170, %171 : vector<16x32xf32>
    %173 = vector.broadcast %152 : vector<1x32xf32> to vector<16x32xf32>
    %174 = arith.addf %172, %173 : vector<16x32xf32>
    %c0_76 = arith.constant 0 : index
    %c0_77 = arith.constant 0 : index
    %c0_78 = arith.constant 0 : index
    %175 = vector.load %arg3[%c0_76, %c0_77, %c0_78] : memref<2x32x128xf32, #tpu.memory_space<vmem>>, vector<1x32x128xf32>
    %176 = vector.shape_cast %175 : vector<1x32x128xf32> to vector<32x128xf32>
    %cst_79 = arith.constant dense<0.000000e+00> : vector<16x128xf32>
    %177 = tpu.matmul %174, %176, %cst_79 {dimension_numbers = #tpu.dot_dimension_numbers<[1], [0], [0], [1], [0, 0, 1, 1], [], []>} : vector<16x32xf32>, vector<32x128xf32>, vector<16x128xf32> -> vector<16x128xf32>
    %c0_80 = arith.constant 0 : index
    %c8 = arith.constant 8 : index
    %c0_81 = arith.constant 0 : index
    %178 = vector.load %arg5[%c0_80, %c8, %c0_81] : memref<2x10x128xf32, #tpu.memory_space<vmem>>, vector<1x1x128xf32>
    %179 = vector.shape_cast %178 : vector<1x1x128xf32> to vector<1x128xf32>
    %180 = vector.broadcast %179 : vector<1x128xf32> to vector<16x128xf32>
    %181 = arith.addf %177, %180 : vector<16x128xf32>
    %cst_82 = arith.constant 5.000000e-01 : f32
    %182 = vector.broadcast %cst_82 : f32 to vector<16x128xf32>
    %183 = arith.mulf %182, %181 : vector<16x128xf32>
    %cst_83 = arith.constant 4.471500e-02 : f32
    %184 = vector.broadcast %cst_83 : f32 to vector<16x128xf32>
    %185 = arith.mulf %184, %181 : vector<16x128xf32>
    %186 = arith.mulf %185, %181 : vector<16x128xf32>
    %187 = arith.mulf %186, %181 : vector<16x128xf32>
    %188 = arith.addf %181, %187 : vector<16x128xf32>
    %cst_84 = arith.constant 0.797884583 : f32
    %189 = vector.broadcast %cst_84 : f32 to vector<16x128xf32>
    %190 = arith.mulf %189, %188 : vector<16x128xf32>
    %191 = math.tanh %190 : vector<16x128xf32>
    %cst_85 = arith.constant 1.000000e+00 : f32
    %192 = vector.broadcast %cst_85 : f32 to vector<16x128xf32>
    %193 = arith.addf %192, %191 : vector<16x128xf32>
    %194 = arith.mulf %183, %193 : vector<16x128xf32>
    %c0_86 = arith.constant 0 : index
    %c0_87 = arith.constant 0 : index
    %c0_88 = arith.constant 0 : index
    %195 = vector.load %arg4[%c0_86, %c0_87, %c0_88] : memref<2x128x32xf32, #tpu.memory_space<vmem>>, vector<1x128x32xf32>
    %196 = vector.shape_cast %195 : vector<1x128x32xf32> to vector<128x32xf32>
    %cst_89 = arith.constant dense<0.000000e+00> : vector<16x32xf32>
    %197 = tpu.matmul %194, %196, %cst_89 {dimension_numbers = #tpu.dot_dimension_numbers<[1], [0], [0], [1], [0, 0, 1, 1], [], []>} : vector<16x128xf32>, vector<128x32xf32>, vector<16x32xf32> -> vector<16x32xf32>
    %198 = arith.addf %148, %197 : vector<16x32xf32>
    %c0_90 = arith.constant 0 : index
    %c9 = arith.constant 9 : index
    %c0_91 = arith.constant 0 : index
    %199 = vector.load %arg5[%c0_90, %c9, %c0_91] : memref<2x10x128xf32, #tpu.memory_space<vmem>>, vector<1x1x32xf32>
    %200 = vector.shape_cast %199 : vector<1x1x32xf32> to vector<1x32xf32>
    %201 = vector.broadcast %200 : vector<1x32xf32> to vector<16x32xf32>
    %202 = arith.addf %198, %201 : vector<16x32xf32>
    %c1_92 = arith.constant 1 : index
    %c0_93 = arith.constant 0 : index
    %c0_94 = arith.constant 0 : index
    %203 = vector.load %arg5[%c1_92, %c0_93, %c0_94] : memref<2x10x128xf32, #tpu.memory_space<vmem>>, vector<1x1x32xf32>
    %204 = vector.shape_cast %203 : vector<1x1x32xf32> to vector<1x32xf32>
    %c1_95 = arith.constant 1 : index
    %c1_96 = arith.constant 1 : index
    %c0_97 = arith.constant 0 : index
    %205 = vector.load %arg5[%c1_95, %c1_96, %c0_97] : memref<2x10x128xf32, #tpu.memory_space<vmem>>, vector<1x1x32xf32>
    %206 = vector.shape_cast %205 : vector<1x1x32xf32> to vector<1x32xf32>
    %cst_98 = arith.constant dense<0.000000e+00> : vector<16xf32>
    %207 = vector.multi_reduction <add>, %202, %cst_98 [1] : vector<16x32xf32> to vector<16xf32>
    %208 = vector.shape_cast %207 : vector<16xf32> to vector<16x1xf32>
    %cst_99 = arith.constant 3.200000e+01 : f32
    %209 = vector.broadcast %cst_99 : f32 to vector<16x1xf32>
    %210 = arith.divf %208, %209 : vector<16x1xf32>
    %211 = arith.mulf %202, %202 : vector<16x32xf32>
    %cst_100 = arith.constant dense<0.000000e+00> : vector<16xf32>
    %212 = vector.multi_reduction <add>, %211, %cst_100 [1] : vector<16x32xf32> to vector<16xf32>
    %213 = vector.shape_cast %212 : vector<16xf32> to vector<16x1xf32>
    %cst_101 = arith.constant 3.200000e+01 : f32
    %214 = vector.broadcast %cst_101 : f32 to vector<16x1xf32>
    %215 = arith.divf %213, %214 : vector<16x1xf32>
    %216 = vector.broadcast %210 : vector<16x1xf32> to vector<16x32xf32>
    %217 = arith.subf %202, %216 : vector<16x32xf32>
    %218 = arith.mulf %210, %210 : vector<16x1xf32>
    %219 = arith.subf %215, %218 : vector<16x1xf32>
    %cst_102 = arith.constant 9.99999974E-6 : f32
    %220 = vector.broadcast %cst_102 : f32 to vector<16x1xf32>
    %221 = arith.addf %219, %220 : vector<16x1xf32>
    %222 = math.rsqrt %221 : vector<16x1xf32>
    %223 = vector.broadcast %222 : vector<16x1xf32> to vector<16x32xf32>
    %224 = arith.mulf %217, %223 : vector<16x32xf32>
    %225 = vector.broadcast %204 : vector<1x32xf32> to vector<16x32xf32>
    %226 = arith.mulf %224, %225 : vector<16x32xf32>
    %227 = vector.broadcast %206 : vector<1x32xf32> to vector<16x32xf32>
    %228 = arith.addf %226, %227 : vector<16x32xf32>
    %c1_103 = arith.constant 1 : index
    %c0_104 = arith.constant 0 : index
    %c0_105 = arith.constant 0 : index
    %c0_106 = arith.constant 0 : index
    %229 = vector.load %arg2[%c1_103, %c0_104, %c0_105, %c0_106] : memref<2x4x32x32xf32, #tpu.memory_space<vmem>>, vector<1x1x32x32xf32>
    %230 = vector.shape_cast %229 : vector<1x1x32x32xf32> to vector<32x32xf32>
    %cst_107 = arith.constant dense<0.000000e+00> : vector<16x32xf32>
    %231 = tpu.matmul %228, %230, %cst_107 {dimension_numbers = #tpu.dot_dimension_numbers<[1], [0], [0], [1], [0, 0, 1, 1], [], []>} : vector<16x32xf32>, vector<32x32xf32>, vector<16x32xf32> -> vector<16x32xf32>
    %c1_108 = arith.constant 1 : index
    %c2_109 = arith.constant 2 : index
    %c0_110 = arith.constant 0 : index
    %232 = vector.load %arg5[%c1_108, %c2_109, %c0_110] : memref<2x10x128xf32, #tpu.memory_space<vmem>>, vector<1x1x32xf32>
    %233 = vector.shape_cast %232 : vector<1x1x32xf32> to vector<1x32xf32>
    %234 = vector.broadcast %233 : vector<1x32xf32> to vector<16x32xf32>
    %235 = arith.addf %231, %234 : vector<16x32xf32>
    %c1_111 = arith.constant 1 : index
    %c1_112 = arith.constant 1 : index
    %c0_113 = arith.constant 0 : index
    %c0_114 = arith.constant 0 : index
    %236 = vector.load %arg2[%c1_111, %c1_112, %c0_113, %c0_114] : memref<2x4x32x32xf32, #tpu.memory_space<vmem>>, vector<1x1x32x32xf32>
    %237 = vector.shape_cast %236 : vector<1x1x32x32xf32> to vector<32x32xf32>
    %cst_115 = arith.constant dense<0.000000e+00> : vector<16x32xf32>
    %238 = tpu.matmul %228, %237, %cst_115 {dimension_numbers = #tpu.dot_dimension_numbers<[1], [0], [0], [1], [0, 0, 1, 1], [], []>} : vector<16x32xf32>, vector<32x32xf32>, vector<16x32xf32> -> vector<16x32xf32>
    %c1_116 = arith.constant 1 : index
    %c3_117 = arith.constant 3 : index
    %c0_118 = arith.constant 0 : index
    %239 = vector.load %arg5[%c1_116, %c3_117, %c0_118] : memref<2x10x128xf32, #tpu.memory_space<vmem>>, vector<1x1x32xf32>
    %240 = vector.shape_cast %239 : vector<1x1x32xf32> to vector<1x32xf32>
    %241 = vector.broadcast %240 : vector<1x32xf32> to vector<16x32xf32>
    %242 = arith.addf %238, %241 : vector<16x32xf32>
    %c1_119 = arith.constant 1 : index
    %c2_120 = arith.constant 2 : index
    %c0_121 = arith.constant 0 : index
    %c0_122 = arith.constant 0 : index
    %243 = vector.load %arg2[%c1_119, %c2_120, %c0_121, %c0_122] : memref<2x4x32x32xf32, #tpu.memory_space<vmem>>, vector<1x1x32x32xf32>
    %244 = vector.shape_cast %243 : vector<1x1x32x32xf32> to vector<32x32xf32>
    %cst_123 = arith.constant dense<0.000000e+00> : vector<16x32xf32>
    %245 = tpu.matmul %228, %244, %cst_123 {dimension_numbers = #tpu.dot_dimension_numbers<[1], [0], [0], [1], [0, 0, 1, 1], [], []>} : vector<16x32xf32>, vector<32x32xf32>, vector<16x32xf32> -> vector<16x32xf32>
    %c1_124 = arith.constant 1 : index
    %c4_125 = arith.constant 4 : index
    %c0_126 = arith.constant 0 : index
    %246 = vector.load %arg5[%c1_124, %c4_125, %c0_126] : memref<2x10x128xf32, #tpu.memory_space<vmem>>, vector<1x1x32xf32>
    %247 = vector.shape_cast %246 : vector<1x1x32xf32> to vector<1x32xf32>
    %248 = vector.broadcast %247 : vector<1x32xf32> to vector<16x32xf32>
    %249 = arith.addf %245, %248 : vector<16x32xf32>
    %cst_127 = arith.constant 0.000000e+00 : f32
    %250 = vector.broadcast %cst_127 : f32 to vector<16x32xf32>
    %c32_128 = arith.constant 32 : index
    %c0_129 = arith.constant 0 : index
    %251 = vector.load %arg6[%c32_128, %c0_129] : memref<96x128xf32, #tpu.memory_space<vmem>>, vector<1x32xf32>
    %252 = vector.broadcast %251 : vector<1x32xf32> to vector<16x32xf32>
    %253 = arith.mulf %235, %252 : vector<16x32xf32>
    %cst_130 = arith.constant dense<0.000000e+00> : vector<16x16xf32>
    %254 = tpu.matmul %253, %242, %cst_130 {dimension_numbers = #tpu.dot_dimension_numbers<[1], [1], [0], [0], [0, 0, 1, 0], [], []>} : vector<16x32xf32>, vector<16x32xf32>, vector<16x16xf32> -> vector<16x16xf32>
    %255 = arith.addf %254, %16 : vector<16x16xf32>
    %cst_131 = arith.constant dense<0xFF800000> : vector<16xf32>
    %256 = vector.multi_reduction <maximumf>, %255, %cst_131 [1] : vector<16x16xf32> to vector<16xf32>
    %257 = vector.shape_cast %256 : vector<16xf32> to vector<16x1xf32>
    %258 = vector.broadcast %257 : vector<16x1xf32> to vector<16x16xf32>
    %259 = arith.subf %255, %258 : vector<16x16xf32>
    %260 = math.exp %259 : vector<16x16xf32>
    %cst_132 = arith.constant dense<0.000000e+00> : vector<16xf32>
    %261 = vector.multi_reduction <add>, %260, %cst_132 [1] : vector<16x16xf32> to vector<16xf32>
    %262 = vector.shape_cast %261 : vector<16xf32> to vector<16x1xf32>
    %263 = tpu.reciprocal %262 {approx = true} : vector<16x1xf32> -> vector<16x1xf32>
    %264 = vector.broadcast %263 : vector<16x1xf32> to vector<16x16xf32>
    %265 = arith.mulf %260, %264 : vector<16x16xf32>
    %266 = vector.broadcast %251 : vector<1x32xf32> to vector<16x32xf32>
    %267 = arith.mulf %249, %266 : vector<16x32xf32>
    %cst_133 = arith.constant dense<0.000000e+00> : vector<16x32xf32>
    %268 = tpu.matmul %265, %267, %cst_133 {dimension_numbers = #tpu.dot_dimension_numbers<[1], [0], [0], [1], [0, 0, 1, 1], [], []>} : vector<16x16xf32>, vector<16x32xf32>, vector<16x32xf32> -> vector<16x32xf32>
    %269 = arith.addf %250, %268 : vector<16x32xf32>
    %c33_134 = arith.constant 33 : index
    %c0_135 = arith.constant 0 : index
    %270 = vector.load %arg6[%c33_134, %c0_135] : memref<96x128xf32, #tpu.memory_space<vmem>>, vector<1x32xf32>
    %271 = vector.broadcast %270 : vector<1x32xf32> to vector<16x32xf32>
    %272 = arith.mulf %235, %271 : vector<16x32xf32>
    %cst_136 = arith.constant dense<0.000000e+00> : vector<16x16xf32>
    %273 = tpu.matmul %272, %242, %cst_136 {dimension_numbers = #tpu.dot_dimension_numbers<[1], [1], [0], [0], [0, 0, 1, 0], [], []>} : vector<16x32xf32>, vector<16x32xf32>, vector<16x16xf32> -> vector<16x16xf32>
    %274 = arith.addf %273, %16 : vector<16x16xf32>
    %cst_137 = arith.constant dense<0xFF800000> : vector<16xf32>
    %275 = vector.multi_reduction <maximumf>, %274, %cst_137 [1] : vector<16x16xf32> to vector<16xf32>
    %276 = vector.shape_cast %275 : vector<16xf32> to vector<16x1xf32>
    %277 = vector.broadcast %276 : vector<16x1xf32> to vector<16x16xf32>
    %278 = arith.subf %274, %277 : vector<16x16xf32>
    %279 = math.exp %278 : vector<16x16xf32>
    %cst_138 = arith.constant dense<0.000000e+00> : vector<16xf32>
    %280 = vector.multi_reduction <add>, %279, %cst_138 [1] : vector<16x16xf32> to vector<16xf32>
    %281 = vector.shape_cast %280 : vector<16xf32> to vector<16x1xf32>
    %282 = tpu.reciprocal %281 {approx = true} : vector<16x1xf32> -> vector<16x1xf32>
    %283 = vector.broadcast %282 : vector<16x1xf32> to vector<16x16xf32>
    %284 = arith.mulf %279, %283 : vector<16x16xf32>
    %285 = vector.broadcast %270 : vector<1x32xf32> to vector<16x32xf32>
    %286 = arith.mulf %249, %285 : vector<16x32xf32>
    %cst_139 = arith.constant dense<0.000000e+00> : vector<16x32xf32>
    %287 = tpu.matmul %284, %286, %cst_139 {dimension_numbers = #tpu.dot_dimension_numbers<[1], [0], [0], [1], [0, 0, 1, 1], [], []>} : vector<16x16xf32>, vector<16x32xf32>, vector<16x32xf32> -> vector<16x32xf32>
    %288 = arith.addf %269, %287 : vector<16x32xf32>
    %c34_140 = arith.constant 34 : index
    %c0_141 = arith.constant 0 : index
    %289 = vector.load %arg6[%c34_140, %c0_141] : memref<96x128xf32, #tpu.memory_space<vmem>>, vector<1x32xf32>
    %290 = vector.broadcast %289 : vector<1x32xf32> to vector<16x32xf32>
    %291 = arith.mulf %235, %290 : vector<16x32xf32>
    %cst_142 = arith.constant dense<0.000000e+00> : vector<16x16xf32>
    %292 = tpu.matmul %291, %242, %cst_142 {dimension_numbers = #tpu.dot_dimension_numbers<[1], [1], [0], [0], [0, 0, 1, 0], [], []>} : vector<16x32xf32>, vector<16x32xf32>, vector<16x16xf32> -> vector<16x16xf32>
    %293 = arith.addf %292, %16 : vector<16x16xf32>
    %cst_143 = arith.constant dense<0xFF800000> : vector<16xf32>
    %294 = vector.multi_reduction <maximumf>, %293, %cst_143 [1] : vector<16x16xf32> to vector<16xf32>
    %295 = vector.shape_cast %294 : vector<16xf32> to vector<16x1xf32>
    %296 = vector.broadcast %295 : vector<16x1xf32> to vector<16x16xf32>
    %297 = arith.subf %293, %296 : vector<16x16xf32>
    %298 = math.exp %297 : vector<16x16xf32>
    %cst_144 = arith.constant dense<0.000000e+00> : vector<16xf32>
    %299 = vector.multi_reduction <add>, %298, %cst_144 [1] : vector<16x16xf32> to vector<16xf32>
    %300 = vector.shape_cast %299 : vector<16xf32> to vector<16x1xf32>
    %301 = tpu.reciprocal %300 {approx = true} : vector<16x1xf32> -> vector<16x1xf32>
    %302 = vector.broadcast %301 : vector<16x1xf32> to vector<16x16xf32>
    %303 = arith.mulf %298, %302 : vector<16x16xf32>
    %304 = vector.broadcast %289 : vector<1x32xf32> to vector<16x32xf32>
    %305 = arith.mulf %249, %304 : vector<16x32xf32>
    %cst_145 = arith.constant dense<0.000000e+00> : vector<16x32xf32>
    %306 = tpu.matmul %303, %305, %cst_145 {dimension_numbers = #tpu.dot_dimension_numbers<[1], [0], [0], [1], [0, 0, 1, 1], [], []>} : vector<16x16xf32>, vector<16x32xf32>, vector<16x32xf32> -> vector<16x32xf32>
    %307 = arith.addf %288, %306 : vector<16x32xf32>
    %c35_146 = arith.constant 35 : index
    %c0_147 = arith.constant 0 : index
    %308 = vector.load %arg6[%c35_146, %c0_147] : memref<96x128xf32, #tpu.memory_space<vmem>>, vector<1x32xf32>
    %309 = vector.broadcast %308 : vector<1x32xf32> to vector<16x32xf32>
    %310 = arith.mulf %235, %309 : vector<16x32xf32>
    %cst_148 = arith.constant dense<0.000000e+00> : vector<16x16xf32>
    %311 = tpu.matmul %310, %242, %cst_148 {dimension_numbers = #tpu.dot_dimension_numbers<[1], [1], [0], [0], [0, 0, 1, 0], [], []>} : vector<16x32xf32>, vector<16x32xf32>, vector<16x16xf32> -> vector<16x16xf32>
    %312 = arith.addf %311, %16 : vector<16x16xf32>
    %cst_149 = arith.constant dense<0xFF800000> : vector<16xf32>
    %313 = vector.multi_reduction <maximumf>, %312, %cst_149 [1] : vector<16x16xf32> to vector<16xf32>
    %314 = vector.shape_cast %313 : vector<16xf32> to vector<16x1xf32>
    %315 = vector.broadcast %314 : vector<16x1xf32> to vector<16x16xf32>
    %316 = arith.subf %312, %315 : vector<16x16xf32>
    %317 = math.exp %316 : vector<16x16xf32>
    %cst_150 = arith.constant dense<0.000000e+00> : vector<16xf32>
    %318 = vector.multi_reduction <add>, %317, %cst_150 [1] : vector<16x16xf32> to vector<16xf32>
    %319 = vector.shape_cast %318 : vector<16xf32> to vector<16x1xf32>
    %320 = tpu.reciprocal %319 {approx = true} : vector<16x1xf32> -> vector<16x1xf32>
    %321 = vector.broadcast %320 : vector<16x1xf32> to vector<16x16xf32>
    %322 = arith.mulf %317, %321 : vector<16x16xf32>
    %323 = vector.broadcast %308 : vector<1x32xf32> to vector<16x32xf32>
    %324 = arith.mulf %249, %323 : vector<16x32xf32>
    %cst_151 = arith.constant dense<0.000000e+00> : vector<16x32xf32>
    %325 = tpu.matmul %322, %324, %cst_151 {dimension_numbers = #tpu.dot_dimension_numbers<[1], [0], [0], [1], [0, 0, 1, 1], [], []>} : vector<16x16xf32>, vector<16x32xf32>, vector<16x32xf32> -> vector<16x32xf32>
    %326 = arith.addf %307, %325 : vector<16x32xf32>
    %c1_152 = arith.constant 1 : index
    %c3_153 = arith.constant 3 : index
    %c0_154 = arith.constant 0 : index
    %c0_155 = arith.constant 0 : index
    %327 = vector.load %arg2[%c1_152, %c3_153, %c0_154, %c0_155] : memref<2x4x32x32xf32, #tpu.memory_space<vmem>>, vector<1x1x32x32xf32>
    %328 = vector.shape_cast %327 : vector<1x1x32x32xf32> to vector<32x32xf32>
    %cst_156 = arith.constant dense<0.000000e+00> : vector<16x32xf32>
    %329 = tpu.matmul %326, %328, %cst_156 {dimension_numbers = #tpu.dot_dimension_numbers<[1], [0], [0], [1], [0, 0, 1, 1], [], []>} : vector<16x32xf32>, vector<32x32xf32>, vector<16x32xf32> -> vector<16x32xf32>
    %330 = arith.addf %202, %329 : vector<16x32xf32>
    %c1_157 = arith.constant 1 : index
    %c5_158 = arith.constant 5 : index
    %c0_159 = arith.constant 0 : index
    %331 = vector.load %arg5[%c1_157, %c5_158, %c0_159] : memref<2x10x128xf32, #tpu.memory_space<vmem>>, vector<1x1x32xf32>
    %332 = vector.shape_cast %331 : vector<1x1x32xf32> to vector<1x32xf32>
    %333 = vector.broadcast %332 : vector<1x32xf32> to vector<16x32xf32>
    %334 = arith.addf %330, %333 : vector<16x32xf32>
    %c1_160 = arith.constant 1 : index
    %c6_161 = arith.constant 6 : index
    %c0_162 = arith.constant 0 : index
    %335 = vector.load %arg5[%c1_160, %c6_161, %c0_162] : memref<2x10x128xf32, #tpu.memory_space<vmem>>, vector<1x1x32xf32>
    %336 = vector.shape_cast %335 : vector<1x1x32xf32> to vector<1x32xf32>
    %c1_163 = arith.constant 1 : index
    %c7_164 = arith.constant 7 : index
    %c0_165 = arith.constant 0 : index
    %337 = vector.load %arg5[%c1_163, %c7_164, %c0_165] : memref<2x10x128xf32, #tpu.memory_space<vmem>>, vector<1x1x32xf32>
    %338 = vector.shape_cast %337 : vector<1x1x32xf32> to vector<1x32xf32>
    %cst_166 = arith.constant dense<0.000000e+00> : vector<16xf32>
    %339 = vector.multi_reduction <add>, %334, %cst_166 [1] : vector<16x32xf32> to vector<16xf32>
    %340 = vector.shape_cast %339 : vector<16xf32> to vector<16x1xf32>
    %cst_167 = arith.constant 3.200000e+01 : f32
    %341 = vector.broadcast %cst_167 : f32 to vector<16x1xf32>
    %342 = arith.divf %340, %341 : vector<16x1xf32>
    %343 = arith.mulf %334, %334 : vector<16x32xf32>
    %cst_168 = arith.constant dense<0.000000e+00> : vector<16xf32>
    %344 = vector.multi_reduction <add>, %343, %cst_168 [1] : vector<16x32xf32> to vector<16xf32>
    %345 = vector.shape_cast %344 : vector<16xf32> to vector<16x1xf32>
    %cst_169 = arith.constant 3.200000e+01 : f32
    %346 = vector.broadcast %cst_169 : f32 to vector<16x1xf32>
    %347 = arith.divf %345, %346 : vector<16x1xf32>
    %348 = vector.broadcast %342 : vector<16x1xf32> to vector<16x32xf32>
    %349 = arith.subf %334, %348 : vector<16x32xf32>
    %350 = arith.mulf %342, %342 : vector<16x1xf32>
    %351 = arith.subf %347, %350 : vector<16x1xf32>
    %cst_170 = arith.constant 9.99999974E-6 : f32
    %352 = vector.broadcast %cst_170 : f32 to vector<16x1xf32>
    %353 = arith.addf %351, %352 : vector<16x1xf32>
    %354 = math.rsqrt %353 : vector<16x1xf32>
    %355 = vector.broadcast %354 : vector<16x1xf32> to vector<16x32xf32>
    %356 = arith.mulf %349, %355 : vector<16x32xf32>
    %357 = vector.broadcast %336 : vector<1x32xf32> to vector<16x32xf32>
    %358 = arith.mulf %356, %357 : vector<16x32xf32>
    %359 = vector.broadcast %338 : vector<1x32xf32> to vector<16x32xf32>
    %360 = arith.addf %358, %359 : vector<16x32xf32>
    %c1_171 = arith.constant 1 : index
    %c0_172 = arith.constant 0 : index
    %c0_173 = arith.constant 0 : index
    %361 = vector.load %arg3[%c1_171, %c0_172, %c0_173] : memref<2x32x128xf32, #tpu.memory_space<vmem>>, vector<1x32x128xf32>
    %362 = vector.shape_cast %361 : vector<1x32x128xf32> to vector<32x128xf32>
    %cst_174 = arith.constant dense<0.000000e+00> : vector<16x128xf32>
    %363 = tpu.matmul %360, %362, %cst_174 {dimension_numbers = #tpu.dot_dimension_numbers<[1], [0], [0], [1], [0, 0, 1, 1], [], []>} : vector<16x32xf32>, vector<32x128xf32>, vector<16x128xf32> -> vector<16x128xf32>
    %c1_175 = arith.constant 1 : index
    %c8_176 = arith.constant 8 : index
    %c0_177 = arith.constant 0 : index
    %364 = vector.load %arg5[%c1_175, %c8_176, %c0_177] : memref<2x10x128xf32, #tpu.memory_space<vmem>>, vector<1x1x128xf32>
    %365 = vector.shape_cast %364 : vector<1x1x128xf32> to vector<1x128xf32>
    %366 = vector.broadcast %365 : vector<1x128xf32> to vector<16x128xf32>
    %367 = arith.addf %363, %366 : vector<16x128xf32>
    %cst_178 = arith.constant 5.000000e-01 : f32
    %368 = vector.broadcast %cst_178 : f32 to vector<16x128xf32>
    %369 = arith.mulf %368, %367 : vector<16x128xf32>
    %cst_179 = arith.constant 4.471500e-02 : f32
    %370 = vector.broadcast %cst_179 : f32 to vector<16x128xf32>
    %371 = arith.mulf %370, %367 : vector<16x128xf32>
    %372 = arith.mulf %371, %367 : vector<16x128xf32>
    %373 = arith.mulf %372, %367 : vector<16x128xf32>
    %374 = arith.addf %367, %373 : vector<16x128xf32>
    %cst_180 = arith.constant 0.797884583 : f32
    %375 = vector.broadcast %cst_180 : f32 to vector<16x128xf32>
    %376 = arith.mulf %375, %374 : vector<16x128xf32>
    %377 = math.tanh %376 : vector<16x128xf32>
    %cst_181 = arith.constant 1.000000e+00 : f32
    %378 = vector.broadcast %cst_181 : f32 to vector<16x128xf32>
    %379 = arith.addf %378, %377 : vector<16x128xf32>
    %380 = arith.mulf %369, %379 : vector<16x128xf32>
    %c1_182 = arith.constant 1 : index
    %c0_183 = arith.constant 0 : index
    %c0_184 = arith.constant 0 : index
    %381 = vector.load %arg4[%c1_182, %c0_183, %c0_184] : memref<2x128x32xf32, #tpu.memory_space<vmem>>, vector<1x128x32xf32>
    %382 = vector.shape_cast %381 : vector<1x128x32xf32> to vector<128x32xf32>
    %cst_185 = arith.constant dense<0.000000e+00> : vector<16x32xf32>
    %383 = tpu.matmul %380, %382, %cst_185 {dimension_numbers = #tpu.dot_dimension_numbers<[1], [0], [0], [1], [0, 0, 1, 1], [], []>} : vector<16x128xf32>, vector<128x32xf32>, vector<16x32xf32> -> vector<16x32xf32>
    %384 = arith.addf %334, %383 : vector<16x32xf32>
    %c1_186 = arith.constant 1 : index
    %c9_187 = arith.constant 9 : index
    %c0_188 = arith.constant 0 : index
    %385 = vector.load %arg5[%c1_186, %c9_187, %c0_188] : memref<2x10x128xf32, #tpu.memory_space<vmem>>, vector<1x1x32xf32>
    %386 = vector.shape_cast %385 : vector<1x1x32xf32> to vector<1x32xf32>
    %387 = vector.broadcast %386 : vector<1x32xf32> to vector<16x32xf32>
    %388 = arith.addf %384, %387 : vector<16x32xf32>
    %c59 = arith.constant 59 : index
    %c0_189 = arith.constant 0 : index
    %389 = vector.load %arg6[%c59, %c0_189] : memref<96x128xf32, #tpu.memory_space<vmem>>, vector<1x32xf32>
    %c60 = arith.constant 60 : index
    %c0_190 = arith.constant 0 : index
    %390 = vector.load %arg6[%c60, %c0_190] : memref<96x128xf32, #tpu.memory_space<vmem>>, vector<1x32xf32>
    %cst_191 = arith.constant dense<0.000000e+00> : vector<16xf32>
    %391 = vector.multi_reduction <add>, %388, %cst_191 [1] : vector<16x32xf32> to vector<16xf32>
    %392 = vector.shape_cast %391 : vector<16xf32> to vector<16x1xf32>
    %cst_192 = arith.constant 3.200000e+01 : f32
    %393 = vector.broadcast %cst_192 : f32 to vector<16x1xf32>
    %394 = arith.divf %392, %393 : vector<16x1xf32>
    %395 = arith.mulf %388, %388 : vector<16x32xf32>
    %cst_193 = arith.constant dense<0.000000e+00> : vector<16xf32>
    %396 = vector.multi_reduction <add>, %395, %cst_193 [1] : vector<16x32xf32> to vector<16xf32>
    %397 = vector.shape_cast %396 : vector<16xf32> to vector<16x1xf32>
    %cst_194 = arith.constant 3.200000e+01 : f32
    %398 = vector.broadcast %cst_194 : f32 to vector<16x1xf32>
    %399 = arith.divf %397, %398 : vector<16x1xf32>
    %400 = vector.broadcast %394 : vector<16x1xf32> to vector<16x32xf32>
    %401 = arith.subf %388, %400 : vector<16x32xf32>
    %402 = arith.mulf %394, %394 : vector<16x1xf32>
    %403 = arith.subf %399, %402 : vector<16x1xf32>
    %cst_195 = arith.constant 9.99999974E-6 : f32
    %404 = vector.broadcast %cst_195 : f32 to vector<16x1xf32>
    %405 = arith.addf %403, %404 : vector<16x1xf32>
    %406 = math.rsqrt %405 : vector<16x1xf32>
    %407 = vector.broadcast %406 : vector<16x1xf32> to vector<16x32xf32>
    %408 = arith.mulf %401, %407 : vector<16x32xf32>
    %409 = vector.broadcast %389 : vector<1x32xf32> to vector<16x32xf32>
    %410 = arith.mulf %408, %409 : vector<16x32xf32>
    %411 = vector.broadcast %390 : vector<1x32xf32> to vector<16x32xf32>
    %412 = arith.addf %410, %411 : vector<16x32xf32>
    %c56 = arith.constant 56 : index
    %c0_196 = arith.constant 0 : index
    %413 = vector.load %arg6[%c56, %c0_196] : memref<96x128xf32, #tpu.memory_space<vmem>>, vector<2x16xf32>
    %cst_197 = arith.constant dense<0.000000e+00> : vector<2x32xf32>
    %414 = tpu.matmul %413, %412, %cst_197 {dimension_numbers = #tpu.dot_dimension_numbers<[1], [0], [0], [1], [0, 0, 1, 1], [], []>} : vector<2x16xf32>, vector<16x32xf32>, vector<2x32xf32> -> vector<2x32xf32>
    %c64 = arith.constant 64 : index
    %c0_198 = arith.constant 0 : index
    %415 = vector.load %arg6[%c64, %c0_198] : memref<96x128xf32, #tpu.memory_space<vmem>>, vector<32x128xf32>
    %cst_199 = arith.constant dense<0.000000e+00> : vector<2x128xf32>
    %416 = tpu.matmul %414, %415, %cst_199 {dimension_numbers = #tpu.dot_dimension_numbers<[1], [0], [0], [1], [0, 0, 1, 1], [], []>} : vector<2x32xf32>, vector<32x128xf32>, vector<2x128xf32> -> vector<2x128xf32>
    %c61 = arith.constant 61 : index
    %c0_200 = arith.constant 0 : index
    %417 = vector.load %arg6[%c61, %c0_200] : memref<96x128xf32, #tpu.memory_space<vmem>>, vector<1x128xf32>
    %418 = vector.broadcast %417 : vector<1x128xf32> to vector<2x128xf32>
    %419 = arith.addf %416, %418 : vector<2x128xf32>
    %c0_201 = arith.constant 0 : index
    %c0_202 = arith.constant 0 : index
    %420 = vector.load %arg7[%c0_201, %c0_202] : memref<2x128xf32, #tpu.memory_space<vmem>>, vector<2x128xf32>
    tpu.vector_store %arg7[%c0_201, %c0_202], %419 {strides = array<i32>} : memref<2x128xf32, #tpu.memory_space<vmem>>, vector<2x128xf32>,
    return
  }
}

</mosaic_0001>

<bundles_post_ra>
// kernel: forward.1
= control target key start
LH: loop header
LB: loop body
LE: loop exit
PB: predicated region body
PF: predicated region fallthrough
CT: control target
= control target key end

     0   :  { %12 = vsyncpa [#allocation3], 0  ;;  %s1923_s27 = smov [#allocation2]   ;;  %s1924_s29 = smov 128   ;;  %s2564_s0 = inlined_call_operand.vmem [shape: s32[16,1], index: 0, kind: input, shape index: {}]   ;;  %s2565_s1 = inlined_call_operand.vmem [shape: f32[16,1], index: 1, kind: input, shape index: {}]   ;;  %s2566_s2 = inlined_call_operand.vmem [shape: f32[2,4,32,32], index: 2, kind: input, shape index: {}]   ;;  %s2567_s3 = inlined_call_operand.vmem [shape: f32[2,32,128], index: 3, kind: input, shape index: {}]   ;;  %s2568_s4 = inlined_call_operand.vmem [shape: f32[2,128,32], index: 4, kind: input, shape index: {}]   ;;  %s2569_s5 = inlined_call_operand.vmem [shape: f32[2,10,128], index: 5, kind: input, shape index: {}]   ;;  %s2570_s6 = inlined_call_operand.hbm [shape: f32[96,128], index: 6, kind: input, shape index: {}]   ;;  %s2571_s7 = inlined_call_operand.vmem [shape: f32[2,128], index: 7, kind: output, shape index: {}]  }
   0x1   :  { %s29_s26 = sshll.u32 %s2570_s6, 4  ;;  %s31_s28 = sshll.u32 %s1923_s27, 4  ;;  %s30_s26 = int_to_ptr.hbm [resolvable:$true] %s29_s26  ;;  %s32_s28 = int_to_ptr.vmem [resolvable:$true] %s31_s28 }
   0x2   :  { %s1925_s30 = smov 8  }
   0x3   :  { %37 = dma.hbm_to_vmem [thread:$0]  %s30_s26, 1536, %s32_s28, [#allocation3], %s1924_s29, %s1924_s29, %s1925_s30  }
   0x4   :  { %1921 = dma.done.wait [#allocation3], 1536  }
   0x5   :  { %1922 = vsyncadd [#allocation3], 4294965760  ;;  %v1926_v0 = vmov 0   ;;  %v42_v1 = vld [vmem:[%s2564_s0] sm:$0xff]  ;;  %v59_v2 = vld [vmem:[#allocation2 + $0x18] sm:$0xff]  ;;  %v44_v7 = vlaneseq  ;;  %vm76_vm0 = vcmask 130048  }
   0x6   :  { %1771 = vset.pattern.permute.xlu0 %v1926_v0  ;;  %1772 = vset.pattern.permute.xlu1 %v1926_v0  ;;  %v43_v3 = vld [vmem:[%s2564_s0 + $0x8] sm:$0xff]  ;;  %v58_v4 = vld [vmem:[#allocation2 + $0x10] sm:$0xff]  ;;  %v60_v5 = vld [vmem:[%s2565_s1] sm:$0xff]  ;;  %v1927_v10 = vmov 0.0   ;;  %vm114_vm3 = vcmask 261120   ;;  %v1928_v33 = vmov 32.0  }
   0x7   :  { %47 = vperm.xlu0 %1771, %v42_v1   ;;  %97 = vmatpush.msra.mxu0 %v59_v2  ;;  %v61_v6 = vld [vmem:[%s2565_s1 + $0x8] sm:$0xff]  ;;  %v45_v8 = vand.u32 127, %v44_v7  ;;  %v1773_v14 = vld [vmem:[#allocation2 + $0x3a] ss:$0 sm:$0xff]  ;;  %v106_v18 = vld [vmem:[#allocation2] sm:$0xff]  ;;  %1801 = vrcp.f32 %v1928_v33 }
   0x8   :  { %65 = vperm.xlu1 %1772, %v60_v5   ;;  %v107_v25 = vld [vmem:[#allocation2 + $0x8] sm:$0xff]  ;;  %v179_v39 = vld [vmem:[%s2566_s2 + $0x18] sm:$0xff]  ;;  %v178_v41 = vld [vmem:[%s2566_s2 + $0x10] sm:$0xff] }
   0x9   :  { %98 = vmatpush.msra.mxu0 %v58_v4  ;;  %200 = vmatpush.msra.mxu2 %v179_v39  ;;  %v177_v42 = vld [vmem:[%s2566_s2 + $0x8] sm:$0xff]  ;;  %v176_v44 = vld [vmem:[%s2566_s2] sm:$0xff]  ;;  %v1638_v46 = vld [vmem:[%s2566_s2 + $0x38] sm:$0xff] }
   0xa   :  { %1761 = vmatpush.msra.mxu3 %v179_v39  ;;  %v1637_v52 = vld [vmem:[%s2566_s2 + $0x30] sm:$0xff]  ;;  %v1644_v53 = vld [vmem:[%s2566_s2 + $0x58] sm:$0xff]  ;;  %v1636_v54 = vld [vmem:[%s2566_s2 + $0x28] sm:$0xff] }
   0xb   :  { %201 = vmatpush.msra.mxu2 %v178_v41  ;;  %v1643_v56 = vld [vmem:[%s2566_s2 + $0x50] sm:$0xff]  ;;  %v1635_v60 = vld [vmem:[%s2566_s2 + $0x20] sm:$0xff]  ;;  %v1642_v61 = vld [vmem:[%s2566_s2 + $0x48] sm:$0xff] }
   0xc   :  { %1762 = vmatpush.msra.mxu3 %v178_v41  ;;  %v1641_v1 = vld [vmem:[%s2566_s2 + $0x40] sm:$0xff] }
   0xd   :  { %v1802_v34 = vpop.eup %1801  ;;  %202 = vmatpush.msra.mxu2 %v177_v42  ;;  %v1776_v33 = vld [vmem:[%s2569_s5 + $0x2] ss:$0 sm:$0xff]  ;;  %v2071_v41 = vld [vmem:[#allocation2 + $0x20] ss:$0 sm:$0xff] }
   0xe   :  { %v122_v35 = vmul.f32 32.0, %v1802_v34  ;;  %vm126_vm4 = vweird.f32 %v1802_v34  ;;  %1763 = vmatpush.msra.mxu3 %v177_v42 }
   0xf   :  { %50 = vperm.xlu0 %1771, %v43_v3   ;;  %203 = vmatpush.msra.mxu2 %v176_v44 }
  0x10   :  { %70 = vperm.xlu1 %1772, %v61_v6   ;;  %v123_v36 = vsub.f32 1.0, %v122_v35  ;;  %1764 = vmatpush.msra.mxu3 %v176_v44 }
  0x11   :  { %230 = vmatpush.msrb.mxu2 %v1638_v46 }
  0x12   :  { %v124_v37 = vmul.f32 %v1802_v34, %v123_v36  ;;  %260 = vmatpush.msrb.mxu3 %v1644_v53 }
  0x13   :  { %231 = vmatpush.msrb.mxu2 %v1637_v52 }
  0x14   :  { %v125_v38 = vadd.f32 %v1802_v34, %v124_v37  ;;  %261 = vmatpush.msrb.mxu3 %v1643_v56 }
  0x15   :  { %232 = vmatpush.msrb.mxu2 %v1636_v54 }
  0x16   :  { %v2009_v43 = vsel %vm126_vm4, %v1802_v34, %v125_v38  ;;  %262 = vmatpush.msrb.mxu3 %v1642_v61  ;;  %v1780_v34 = vld [vmem:[%s2569_s5 + $0x4] ss:$0 sm:$0xff]  ;;  %v2065_v38 = vld [vmem:[#allocation2 + $0x22] ss:$0 sm:$0xff] }
  0x17   :  { %233 = vmatpush.msrb.mxu2 %v1635_v60 }
  0x18   :  { %263 = vmatpush.msrb.mxu3 %v1641_v1 }
  0x79   :  { %v48_v9 = vpop.permute.xlu0 %47 }
  0x7a   :  { %vm52_vm1 = vcmp.eq.s32.totalorder %v48_v9, %v45_v8  ;;  %v66_v15 = vpop.permute.xlu1 %65 }
  0x7b   :  { %v1629_v11 = vsel %vm52_vm1, 1.0, %v1927_v10  ;;  %v74_v16 = vmul.f32 %v1773_v14, %v66_v15 }
  0x7c   :  { %1631 = vmatmul.msk.f32.vlgmr.msra.gmra.mxu0 %vm76_vm0, %v1629_v11 }
  0x81   :  { %v51_v12 = vpop.permute.xlu0 %50 }
  0x82   :  { %vm53_vm2 = vcmp.eq.s32.totalorder %v51_v12, %v45_v8  ;;  %v71_v21 = vpop.permute.xlu1 %70 }
  0x83   :  { %v1630_v13 = vsel %vm53_vm2, 1.0, %v1927_v10  ;;  %v75_v23 = vmul.f32 %v1773_v14, %v71_v21  ;;  %v1774_v14 = vld [vmem:[%s2569_s5] ss:$0 sm:$0xff] }
  0x84   :  { %1632 = vmatmul.msk.f32.gmra.mxu0 %vm76_vm0, %v1630_v13 }
  0xf9   :  { %v100_v17 = vpop.f32.mrf.mxu0 }
  0xfa   :  { %v101_v19 = vadd.f32 %v100_v17, %v74_v16 }
  0xfc   :  { %v1986_v20 = vadd.f32 %v106_v18, %v101_v19  ;;  %v1775_v19 = vld [vmem:[%s2569_s5 + $0x1] ss:$0 sm:$0xff] }
  0xfe   :  { %v115_v22 = vsel %vm114_vm3, %v1986_v20, 0.0  ;;  %v130_v27 = vmul.f32 %v1986_v20, %v1986_v20 }
  0xff   :  { %116 = vadd.xlane.f32.xlu2 %v115_v22 }
 0x100   :  { %v132_v29 = vsel %vm114_vm3, %v130_v27, 0.0 }
 0x101   :  { %v103_v24 = vpop.f32.mrf.mxu0 }
 0x102   :  { %v104_v26 = vadd.f32 %v103_v24, %v75_v23 }
 0x104   :  { %v1992_v28 = vadd.f32 %v107_v25, %v104_v26 }
 0x106   :  { %v118_v30 = vsel %vm114_vm3, %v1992_v28, 0.0  ;;  %v131_v31 = vmul.f32 %v1992_v28, %v1992_v28 }
 0x107   :  { %133 = vadd.xlane.f32.xlu2 %v132_v29  ;;  %119 = vadd.xlane.f32.xlu0 %v118_v30 }
 0x108   :  { %v135_v32 = vsel %vm114_vm3, %v131_v31, 0.0 }
 0x109   :  { %136 = vadd.xlane.f32.xlu1 %v135_v32  ;;  %v1779_v32 = vld [vmem:[%s2569_s5 + $0x3] ss:$0 sm:$0xff] }
 0x172   :  { %v117_v40 = vpop.xlane.xlu2 %116 }
 0x173   :  { %v128_v45 = vmul.f32 %v2009_v43, %v117_v40  ;;  %v2069_v40 = vld [vmem:[#allocation2 + $0x21] ss:$0 sm:$0xff] }
 0x175   :  { %v142_v49 = vmul.f32 %v128_v45, %v128_v45  ;;  %v140_v13 = vsub.f32 %v1986_v20, %v128_v45 }
 0x17a   :  { %v134_v47 = vpop.xlane.xlu2 %133  ;;  %v120_v48 = vpop.xlane.xlu0 %119 }
 0x17b   :  { %v138_v50 = vmul.f32 %v134_v47, %v2009_v43  ;;  %v129_v51 = vmul.f32 %v2009_v43, %v120_v48 }
 0x17c   :  { %v137_v55 = vpop.xlane.xlu1 %136 }
 0x17d   :  { %v144_v57 = vsub.f32 %v138_v50, %v142_v49  ;;  %v143_v58 = vmul.f32 %v129_v51, %v129_v51  ;;  %v139_v59 = vmul.f32 %v137_v55, %v2009_v43  ;;  %v141_v17 = vsub.f32 %v1992_v28, %v129_v51  ;;  %v2082_v51 = vld [vmem:[#allocation2 + $0x23] ss:$0 sm:$0xff] }
 0x17f   :  { %v146_v62 = vadd.f32 1e-05, %v144_v57  ;;  %v145_v63 = vsub.f32 %v139_v59, %v143_v58 }
 0x181   :  { %1803 = vrsqrt.f32 %v146_v62  ;;  %v147_v0 = vadd.f32 1e-05, %v145_v63  ;;  %vm154_vm6 = vweird.f32 %v146_v62 }
 0x183   :  { %1805 = vrsqrt.f32 %v147_v0  ;;  %vm164_vm9 = vweird.f32 %v147_v0 }
 0x187   :  { %v1804_v2 = vpop.eup %1803 }
 0x188   :  { %v149_v3 = vmul.f32 %v1804_v2, %v146_v62  ;;  %vm155_vm5 = vweird.f32 %v1804_v2  ;;  %v2111_v62 = vld [vmem:[#allocation2 + $0x28] sm:$0xff] }
 0x189   :  { %v1806_v4 = vpop.eup %1805  ;;  %vm156_vm8 = vmor %vm154_vm6, %vm155_vm5 }
 0x18a   :  { %v150_v5 = vmul.f32 %v1804_v2, %v149_v3  ;;  %v159_v6 = vmul.f32 %v1806_v4, %v147_v0  ;;  %vm165_vm7 = vweird.f32 %v1806_v4  ;;  %v2115_v3 = vld [vmem:[#allocation2 + $0x30] sm:$0xff] }
 0x18b   :  { %vm166_vm10 = vmor %vm164_vm9, %vm165_vm7 }
 0x18c   :  { %v151_v7 = vmul.f32 0.5, %v150_v5  ;;  %v160_v8 = vmul.f32 %v1806_v4, %v159_v6 }
 0x18e   :  { %v152_v9 = vsub.f32 1.5, %v151_v7  ;;  %v161_v10 = vmul.f32 0.5, %v160_v8 }
 0x190   :  { %v153_v11 = vmul.f32 %v1804_v2, %v152_v9  ;;  %v162_v12 = vsub.f32 1.5, %v161_v10 }
 0x192   :  { %v163_v15 = vmul.f32 %v1806_v4, %v162_v12  ;;  %v157_v16 = vsel %vm156_vm8, %v1804_v2, %v153_v11 }
 0x193   :  { %v168_v18 = vmul.f32 %v157_v16, %v140_v13 }
 0x194   :  { %v167_v21 = vsel %vm166_vm10, %v1806_v4, %v163_v15 }
 0x195   :  { %v171_v22 = vmul.f32 %v1774_v14, %v168_v18  ;;  %v169_v23 = vmul.f32 %v167_v21, %v141_v17 }
 0x197   :  { %v174_v24 = vadd.f32 %v1775_v19, %v171_v22  ;;  %v172_v25 = vmul.f32 %v1774_v14, %v169_v23 }
 0x199   :  { %1633 = vmatmul.msk.f32.vlgmr.msra.gmra.mxu2 %vm114_vm3, %v174_v24  ;;  %v175_v26 = vadd.f32 %v1775_v19, %v172_v25 }
 0x19b   :  { %1634 = vmatmul.msk.f32.vlgmr.msra.gmra.mxu3 %vm114_vm3, %v175_v26 }
 0x1a1   :  { %1639 = vmatmul.msk.f32.vlgmr.msrb.gmra.mxu2 %vm114_vm3, %v174_v24 }
 0x1a3   :  { %1645 = vmatmul.msk.f32.vlgmr.msrb.gmra.mxu3 %vm114_vm3, %v174_v24 }
 0x1a9   :  { %1640 = vmatmul.msk.f32.gmra.mxu2 %vm114_vm3, %v175_v26 }
 0x1ab   :  { %1646 = vmatmul.msk.f32.gmra.mxu3 %vm114_vm3, %v175_v26 }
 0x21c   :  { %v205_v27 = vpop.f32.mrf.mxu2 }
 0x21d   :  { %v2073_v42 = vadd.f32 %v1776_v33, %v205_v27 }
 0x21e   :  { %v208_v29 = vpop.f32.mrf.mxu3 }
 0x21f   :  { %v273_v52 = vmul.f32 %v2071_v41, %v2073_v42  ;;  %v336_v53 = vmul.f32 %v2069_v40, %v2073_v42  ;;  %v2094_v56 = vadd.f32 %v1776_v33, %v208_v29  ;;  %v451_v60 = vmul.f32 %v2065_v38, %v2073_v42 }
 0x221   :  { %v274_v58 = vmul.f32 %v2071_v41, %v2094_v56  ;;  %v337_v59 = vmul.f32 %v2069_v40, %v2094_v56  ;;  %v452_v61 = vmul.f32 %v2065_v38, %v2094_v56 }
 0x224   :  { %v235_v30 = vpop.f32.mrf.mxu2 }
 0x225   :  { %v236_v45 = vadd.f32 %v1779_v32, %v235_v30 }
 0x226   :  { %v265_v31 = vpop.f32.mrf.mxu3 }
 0x227   :  { %v266_v44 = vadd.f32 %v1780_v34, %v265_v31 }
 0x229   :  { %v389_v49 = vmul.f32 %v2069_v40, %v266_v44  ;;  %v332_v50 = vmul.f32 %v2071_v41, %v266_v44  ;;  %v504_v54 = vmul.f32 %v2065_v38, %v266_v44  ;;  %v592_v57 = vmul.f32 %v2082_v51, %v266_v44 }
 0x22a   :  { %v539_v44 = vmul.f32 %v2082_v51, %v2073_v42 }
 0x22c   :  { %v238_v35 = vpop.f32.mrf.mxu2 }
 0x22d   :  { %v239_v36 = vadd.f32 %v1779_v32, %v238_v35 }
 0x22e   :  { %v268_v37 = vpop.f32.mrf.mxu3 }
 0x22f   :  { %v269_v39 = vadd.f32 %v1780_v34, %v268_v37  ;;  %1647 = vmatpush.xpose.msk.msrb.mxu0 %vm114_vm3, %v239_v36  ;;  %1651 = vmatpush.xpose.msk.msra.mxu1 %vm114_vm3, %v239_v36 }
 0x231   :  { %v390_v46 = vmul.f32 %v2069_v40, %v269_v39  ;;  %v333_v47 = vmul.f32 %v2071_v41, %v269_v39  ;;  %v505_v48 = vmul.f32 %v2065_v38, %v269_v39  ;;  %v593_v55 = vmul.f32 %v2082_v51, %v269_v39 }
 0x233   :  { %1648 = vmatpush.xpose.msk.msrb.mxu0 %vm114_vm3, %v236_v45  ;;  %1652 = vmatpush.xpose.msk.msra.mxu1 %vm114_vm3, %v236_v45 }
 0x234   :  { %411 = vmatpush.msra.mxu2 %v390_v46  ;;  %440 = vmatpush.msra.mxu3 %v333_v47  ;;  %v540_v47 = vmul.f32 %v2082_v51, %v2094_v56 }
 0x236   :  { %412 = vmatpush.msra.mxu2 %v389_v49  ;;  %441 = vmatpush.msra.mxu3 %v332_v50 }
 0x237   :  { %1659 = vmatpush.xpose.msk.msra.mxu0 %vm114_vm3, %v239_v36  ;;  %526 = vmatpush.msrb.mxu1 %v505_v48 }
 0x238   :  { %1649 = vmatmul.msk.f32.vlgmr.msrb.gmra.mxu0 %vm114_vm3, %v273_v52  ;;  %1653 = vmatmul.msk.f32.vlgmr.msra.gmra.mxu1 %vm114_vm3, %v336_v53 }
 0x239   :  { %527 = vmatpush.msrb.mxu1 %v504_v54  ;;  %1665 = vmatpush.xpose.msk.msrb.mxu2 %vm114_vm3, %v239_v36 }
 0x23a   :  { %614 = vmatpush.msrb.mxu3 %v593_v55 }
 0x23b   :  { %1660 = vmatpush.xpose.msk.msra.mxu0 %vm114_vm3, %v236_v45 }
 0x23c   :  { %615 = vmatpush.msrb.mxu3 %v592_v57 }
 0x23d   :  { %1666 = vmatpush.xpose.msk.msrb.mxu2 %vm114_vm3, %v236_v45 }
 0x240   :  { %1650 = vmatmul.msk.f32.gmra.mxu0 %vm114_vm3, %v274_v58  ;;  %1654 = vmatmul.msk.f32.gmra.mxu1 %vm114_vm3, %v337_v59 }
 0x248   :  { %1661 = vmatmul.msk.f32.vlgmr.msra.gmra.mxu0 %vm114_vm3, %v451_v60 }
 0x250   :  { %1662 = vmatmul.msk.f32.gmra.mxu0 %vm114_vm3, %v452_v61 }
 0x2b5   :  { %v304_v63 = vpop.f32.mrf.mxu0  ;;  %v361_v0 = vpop.f32.mrf.mxu1 }
 0x2b6   :  { %v362_v1 = vadd.f32 %v361_v0, %v2111_v62  ;;  %v305_v22 = vadd.f32 %v304_v63, %v2111_v62 }
 0x2b8   :  { %v367_v2 = vsel %vm76_vm0, %v362_v1, -inf  ;;  %v310_v23 = vsel %vm76_vm0, %v305_v22, -inf }
 0x2b9   :  { %368 = vmax.xlane.f32.xlu2 %v367_v2 }
 0x2bd   :  { %v307_v4 = vpop.f32.mrf.mxu0  ;;  %v364_v5 = vpop.f32.mrf.mxu1 }
 0x2be   :  { %v365_v6 = vadd.f32 %v364_v5, %v2115_v3  ;;  %v308_v24 = vadd.f32 %v307_v4, %v2115_v3 }
 0x2c0   :  { %v370_v7 = vsel %vm76_vm0, %v365_v6, -inf  ;;  %v313_v25 = vsel %vm76_vm0, %v308_v24, -inf }
 0x2c1   :  { %371 = vmax.xlane.f32.xlu2 %v370_v7 }
 0x2c5   :  { %v476_v8 = vpop.f32.mrf.mxu0 }
 0x2c6   :  { %v477_v9 = vadd.f32 %v476_v8, %v2111_v62 }
 0x2c8   :  { %v482_v10 = vsel %vm76_vm0, %v477_v9, -inf }
 0x2c9   :  { %483 = vmax.xlane.f32.xlu1 %v482_v10 }
 0x2cd   :  { %v479_v0 = vpop.f32.mrf.mxu0 }
 0x2ce   :  { %v480_v2 = vadd.f32 %v479_v0, %v2115_v3 }
 0x32c   :  { %v369_v11 = vpop.xlane.xlu2 %368 }
 0x32d   :  { %v373_v12 = vsub.f32 %v362_v1, %v369_v11 }
 0x32f   :  { %v375_v13 = vmul.f32 1.442695, %v373_v12 }
 0x331   :  { %1807 = vpow2.f32 %v375_v13 }
 0x334   :  { %v372_v14 = vpop.xlane.xlu2 %371 }
 0x335   :  { %v374_v15 = vsub.f32 %v365_v6, %v372_v14  ;;  %v485_v6 = vsel %vm76_vm0, %v480_v2, -inf }
 0x337   :  { %v1808_v16 = vpop.eup %1807  ;;  %v377_v17 = vmul.f32 1.442695, %v374_v15 }
 0x338   :  { %v379_v18 = vsel %vm76_vm0, %v1808_v16, 0.0 }
 0x339   :  { %1809 = vpow2.f32 %v377_v17  ;;  %380 = vadd.xlane.f32.xlu2 %v379_v18 }
 0x33c   :  { %v484_v32 = vpop.xlane.xlu1 %483 }
 0x33d   :  { %v488_v36 = vsub.f32 %v477_v9, %v484_v32 }
 0x33f   :  { %v1810_v19 = vpop.eup %1809  ;;  %v490_v39 = vmul.f32 1.442695, %v488_v36 }
 0x340   :  { %v382_v21 = vsel %vm76_vm0, %v1810_v19, 0.0 }
 0x341   :  { %383 = vadd.xlane.f32.xlu2 %v382_v21 }
 0x349   :  { %311 = vmax.xlane.f32.xlu2 %v310_v23 }
 0x351   :  { %314 = vmax.xlane.f32.xlu2 %v313_v25 }
 0x3ac   :  { %v381_v26 = vpop.xlane.xlu2 %380 }
 0x3ad   :  { %1811 = vrcp.f32 %v381_v26 }
 0x3b3   :  { %v1812_v27 = vpop.eup %1811 }
 0x3b4   :  { %v387_v29 = vmul.f32 %v1812_v27, %v1808_v16  ;;  %v384_v30 = vpop.xlane.xlu2 %383 }
 0x3b5   :  { %1813 = vrcp.f32 %v384_v30  ;;  %v1674_v30 = vld [vmem:[%s2566_s2 + $0x78] sm:$0xff] }
 0x3b6   :  { %1655 = vmatmul.msk.f32.vlgmr.msra.gmra.mxu2 %vm76_vm0, %v387_v29  ;;  %648 = vmatpush.msrb.mxu0 %v1674_v30 }
 0x3bb   :  { %v1814_v31 = vpop.eup %1813 }
 0x3bc   :  { %v312_v33 = vpop.xlane.xlu2 %311  ;;  %v388_v34 = vmul.f32 %v1814_v31, %v1810_v19  ;;  %v1673_v31 = vld [vmem:[%s2566_s2 + $0x70] sm:$0xff] }
 0x3bd   :  { %v316_v35 = vsub.f32 %v305_v22, %v312_v33  ;;  %649 = vmatpush.msrb.mxu0 %v1673_v31  ;;  %v786_v31 = vld [vmem:[%s2568_s4 + $0x60] sm:$0xff] }
 0x3be   :  { %1656 = vmatmul.msk.f32.gmra.mxu2 %vm76_vm0, %v388_v34 }
 0x3bf   :  { %v318_v37 = vmul.f32 1.442695, %v316_v35 }
 0x3c1   :  { %1815 = vpow2.f32 %v318_v37 }
 0x3c2   :  { %1817 = vpow2.f32 %v490_v39 }
 0x3c4   :  { %v315_v57 = vpop.xlane.xlu2 %314 }
 0x3c5   :  { %v317_v60 = vsub.f32 %v308_v24, %v315_v57 }
 0x3c6   :  { %1667 = vmatmul.msk.f32.vlgmr.msrb.gmra.mxu2 %vm114_vm3, %v539_v44 }
 0x3c7   :  { %v1816_v45 = vpop.eup %1815  ;;  %v320_v1 = vmul.f32 1.442695, %v317_v60 }
 0x3c8   :  { %v322_v46 = vsel %vm76_vm0, %v1816_v45, 0.0  ;;  %v1818_v48 = vpop.eup %1817 }
 0x3c9   :  { %323 = vadd.xlane.f32.xlu1 %v322_v46  ;;  %v494_v49 = vsel %vm76_vm0, %v1818_v48, 0.0  ;;  %v1672_v46 = vld [vmem:[%s2566_s2 + $0x68] sm:$0xff] }
 0x3ca   :  { %650 = vmatpush.msrb.mxu0 %v1672_v46  ;;  %v1784_v46 = vld [vmem:[%s2569_s5 + $0x6] ss:$0 sm:$0xff] }
 0x3ce   :  { %1668 = vmatmul.msk.f32.gmra.mxu2 %vm114_vm3, %v540_v47  ;;  %v1671_v47 = vld [vmem:[%s2566_s2 + $0x60] sm:$0xff] }
 0x3cf   :  { %651 = vmatpush.msrb.mxu0 %v1671_v47 }
 0x3d1   :  { %495 = vadd.xlane.f32.xlu1 %v494_v49 }
 0x439   :  { %v2137_v50 = vpop.f32.mrf.mxu2 }
 0x43c   :  { %v324_v52 = vpop.xlane.xlu1 %323 }
 0x43d   :  { %1819 = vrcp.f32 %v324_v52 }
 0x441   :  { %v2139_v42 = vpop.f32.mrf.mxu2 }
 0x443   :  { %v1820_v53 = vpop.eup %1819 }
 0x444   :  { %v330_v54 = vmul.f32 %v1820_v53, %v1816_v45  ;;  %v496_v55 = vpop.xlane.xlu1 %495 }
 0x445   :  { %1821 = vrcp.f32 %v496_v55 }
 0x446   :  { %1657 = vmatmul.msk.f32.vlgmr.msra.gmra.mxu3 %vm76_vm0, %v330_v54  ;;  %1823 = vpow2.f32 %v320_v1 }
 0x449   :  { %v564_v56 = vpop.f32.mrf.mxu2 }
 0x44a   :  { %v565_v58 = vadd.f32 %v564_v56, %v2111_v62 }
 0x44b   :  { %v1822_v59 = vpop.eup %1821 }
 0x44c   :  { %v570_v61 = vsel %vm76_vm0, %v565_v58, -inf  ;;  %v502_v63 = vmul.f32 %v1822_v59, %v1818_v48  ;;  %v1824_v8 = vpop.eup %1823 }
 0x44d   :  { %571 = vmax.xlane.f32.xlu0 %v570_v61  ;;  %v325_v9 = vsel %vm76_vm0, %v1824_v8, 0.0 }
 0x44e   :  { %1663 = vmatmul.msk.f32.vlgmr.msrb.gmra.mxu1 %vm76_vm0, %v502_v63  ;;  %v1783_v63 = vld [vmem:[%s2569_s5 + $0x5] ss:$0 sm:$0xff] }
 0x451   :  { %v567_v4 = vpop.f32.mrf.mxu2 }
 0x452   :  { %v568_v5 = vadd.f32 %v567_v4, %v2115_v3 }
 0x454   :  { %v573_v7 = vsel %vm76_vm0, %v568_v5, -inf }
 0x455   :  { %486 = vmax.xlane.f32.xlu0 %v485_v6  ;;  %574 = vmax.xlane.f32.xlu2 %v573_v7 }
 0x45d   :  { %326 = vadd.xlane.f32.xlu2 %v325_v9 }
 0x4c0   :  { %v572_v10 = vpop.xlane.xlu0 %571 }
 0x4c1   :  { %v576_v11 = vsub.f32 %v565_v58, %v572_v10  ;;  %v724_v10 = vld [vmem:[%s2567_s3 + $0x18] sm:$0xff] }
 0x4c2   :  { %745 = vmatpush.msra.mxu1 %v724_v10  ;;  %v776_v10 = vld [vmem:[%s2568_s4 + $0x10] sm:$0xff] }
 0x4c3   :  { %v578_v12 = vmul.f32 1.442695, %v576_v11  ;;  %v722_v11 = vld [vmem:[%s2567_s3 + $0x8] sm:$0xff] }
 0x4c5   :  { %1825 = vpow2.f32 %v578_v12 }
 0x4c8   :  { %v487_v13 = vpop.xlane.xlu0 %486  ;;  %v575_v14 = vpop.xlane.xlu2 %574 }
 0x4c9   :  { %v489_v15 = vsub.f32 %v480_v2, %v487_v13  ;;  %v577_v16 = vsub.f32 %v568_v5, %v575_v14  ;;  %v443_v48 = vpop.f32.mrf.mxu3  ;;  %v721_v14 = vld [vmem:[%s2567_s3] sm:$0xff] }
 0x4ca   :  { %v444_v52 = vadd.f32 %v443_v48, %v2137_v50 }
 0x4cb   :  { %v1826_v17 = vpop.eup %1825  ;;  %v492_v18 = vmul.f32 1.442695, %v489_v15  ;;  %v580_v19 = vmul.f32 1.442695, %v577_v16  ;;  %v529_v53 = vpop.f32.mrf.mxu1 }
 0x4cc   :  { %v582_v21 = vsel %vm76_vm0, %v1826_v17, 0.0  ;;  %v535_v54 = vadd.f32 %v529_v53, %v444_v52  ;;  %v1785_v53 = vld [vmem:[%s2569_s5 + $0x7] ss:$0 sm:$0xff] }
 0x4cd   :  { %1827 = vpow2.f32 %v492_v18  ;;  %583 = vadd.xlane.f32.xlu0 %v582_v21 }
 0x4ce   :  { %1829 = vpow2.f32 %v580_v19 }
 0x4d0   :  { %v327_v22 = vpop.xlane.xlu2 %326 }
 0x4d1   :  { %1831 = vrcp.f32 %v327_v22 }
 0x4d3   :  { %v1828_v23 = vpop.eup %1827 }
 0x4d4   :  { %v1830_v24 = vpop.eup %1829  ;;  %v497_v25 = vsel %vm76_vm0, %v1828_v23, 0.0 }
 0x4d5   :  { %498 = vadd.xlane.f32.xlu0 %v497_v25  ;;  %v585_v26 = vsel %vm76_vm0, %v1830_v24, 0.0 }
 0x4d6   :  { %586 = vadd.xlane.f32.xlu2 %v585_v26 }
 0x4d7   :  { %v1832_v27 = vpop.eup %1831 }
 0x4d8   :  { %v331_v29 = vmul.f32 %v1832_v27, %v1824_v8 }
 0x4da   :  { %1658 = vmatmul.msk.f32.gmra.mxu3 %vm76_vm0, %v331_v29  ;;  %v787_v29 = vld [vmem:[%s2568_s4 + $0x68] sm:$0xff] }
 0x540   :  { %v584_v32 = vpop.xlane.xlu0 %583 }
 0x541   :  { %1833 = vrcp.f32 %v584_v32 }
 0x547   :  { %v1834_v33 = vpop.eup %1833 }
 0x548   :  { %v590_v34 = vmul.f32 %v1834_v33, %v1826_v17  ;;  %v499_v35 = vpop.xlane.xlu0 %498 }
 0x549   :  { %1835 = vrcp.f32 %v499_v35  ;;  %v587_v36 = vpop.xlane.xlu2 %586 }
 0x54a   :  { %1837 = vrcp.f32 %v587_v36  ;;  %1669 = vmatmul.msk.f32.vlgmr.msrb.gmra.mxu3 %vm76_vm0, %v590_v34 }
 0x54f   :  { %v1836_v37 = vpop.eup %1835 }
 0x550   :  { %v1838_v39 = vpop.eup %1837  ;;  %v503_v44 = vmul.f32 %v1836_v37, %v1828_v23  ;;  %v789_v23 = vld [vmem:[%s2568_s4 + $0x78] sm:$0xff] }
 0x551   :  { %v591_v45 = vmul.f32 %v1838_v39, %v1830_v24  ;;  %v788_v24 = vld [vmem:[%s2568_s4 + $0x70] sm:$0xff]  ;;  %790 = vmatpush.msra.mxu2 %v789_v23 }
 0x552   :  { %1664 = vmatmul.msk.f32.gmra.mxu1 %vm76_vm0, %v503_v44 }
 0x553   :  { %1670 = vmatmul.msk.f32.gmra.mxu3 %vm76_vm0, %v591_v45  ;;  %791 = vmatpush.msra.mxu2 %v788_v24 }
 0x555   :  { %792 = vmatpush.msra.mxu2 %v787_v29 }
 0x557   :  { %793 = vmatpush.msra.mxu2 %v786_v31 }
 0x55d   :  { %v446_v49 = vpop.f32.mrf.mxu3 }
 0x55e   :  { %v447_v58 = vadd.f32 %v446_v49, %v2139_v42 }
 0x5cd   :  { %v617_v55 = vpop.f32.mrf.mxu3 }
 0x5ce   :  { %v623_v57 = vadd.f32 %v617_v55, %v535_v54 }
 0x5cf   :  { %v532_v56 = vpop.f32.mrf.mxu1 }
 0x5d0   :  { %1675 = vmatmul.msk.f32.vlgmr.msrb.gmra.mxu0 %vm114_vm3, %v623_v57  ;;  %v536_v59 = vadd.f32 %v532_v56, %v447_v58 }
 0x5d6   :  { %v620_v60 = vpop.f32.mrf.mxu3 }
 0x5d7   :  { %v624_v61 = vadd.f32 %v620_v60, %v536_v59 }
 0x5d9   :  { %1676 = vmatmul.msk.f32.gmra.mxu0 %vm114_vm3, %v624_v61 }
 0x64d   :  { %v653_v0 = vpop.f32.mrf.mxu0 }
 0x64e   :  { %v659_v50 = vadd.f32 %v653_v0, %v1986_v20 }
 0x650   :  { %v2177_v1 = vadd.f32 %v1783_v63, %v659_v50  ;;  %v785_v50 = vld [vmem:[%s2568_s4 + $0x58] sm:$0xff] }
 0x651   :  { %794 = vmatpush.msra.mxu2 %v785_v50 }
 0x652   :  { %v667_v2 = vsel %vm114_vm3, %v2177_v1, 0.0  ;;  %v675_v42 = vmul.f32 %v2177_v1, %v2177_v1 }
 0x653   :  { %668 = vadd.xlane.f32.xlu1 %v667_v2  ;;  %v784_v2 = vld [vmem:[%s2568_s4 + $0x50] sm:$0xff] }
 0x654   :  { %v677_v4 = vsel %vm114_vm3, %v675_v42, 0.0  ;;  %795 = vmatpush.msra.mxu2 %v784_v2  ;;  %v783_v42 = vld [vmem:[%s2568_s4 + $0x48] sm:$0xff] }
 0x655   :  { %678 = vadd.xlane.f32.xlu2 %v677_v4  ;;  %v782_v4 = vld [vmem:[%s2568_s4 + $0x40] sm:$0xff] }
 0x656   :  { %v656_v5 = vpop.f32.mrf.mxu0  ;;  %796 = vmatpush.msra.mxu2 %v783_v42  ;;  %v1681_v42 = vld [vmem:[%s2566_s2 + $0x80] sm:$0xff] }
 0x657   :  { %v660_v6 = vadd.f32 %v656_v5, %v1992_v28  ;;  %v723_v28 = vld [vmem:[%s2567_s3 + $0x10] sm:$0xff]  ;;  %v781_v5 = vld [vmem:[%s2568_s4 + $0x38] sm:$0xff] }
 0x658   :  { %746 = vmatpush.msra.mxu1 %v723_v28  ;;  %797 = vmatpush.msra.mxu2 %v782_v4  ;;  %v775_v28 = vld [vmem:[%s2568_s4 + $0x8] sm:$0xff]  ;;  %v1688_v4 = vld [vmem:[%s2566_s2 + $0xa0] sm:$0xff] }
 0x659   :  { %v2185_v7 = vadd.f32 %v1783_v63, %v660_v6  ;;  %v780_v6 = vld [vmem:[%s2568_s4 + $0x30] sm:$0xff] }
 0x65a   :  { %747 = vmatpush.msra.mxu1 %v722_v11  ;;  %798 = vmatpush.msra.mxu2 %v781_v5  ;;  %v774_v11 = vld [vmem:[%s2568_s4] sm:$0xff] }
 0x65b   :  { %v670_v20 = vsel %vm114_vm3, %v2185_v7, 0.0  ;;  %v676_v8 = vmul.f32 %v2185_v7, %v2185_v7  ;;  %v1695_v5 = vld [vmem:[%s2566_s2 + $0xc0] sm:$0xff] }
 0x65c   :  { %671 = vadd.xlane.f32.xlu0 %v670_v20  ;;  %748 = vmatpush.msra.mxu1 %v721_v14  ;;  %v779_v20 = vld [vmem:[%s2568_s4 + $0x28] sm:$0xff] }
 0x65d   :  { %v680_v9 = vsel %vm114_vm3, %v676_v8, 0.0  ;;  %799 = vmatpush.msra.mxu2 %v780_v6  ;;  %v778_v8 = vld [vmem:[%s2568_s4 + $0x20] sm:$0xff] }
 0x65e   :  { %681 = vadd.xlane.f32.xlu1 %v680_v9  ;;  %v777_v9 = vld [vmem:[%s2568_s4 + $0x18] sm:$0xff] }
 0x65f   :  { %800 = vmatpush.msra.mxu2 %v779_v20 }
 0x661   :  { %801 = vmatpush.msra.mxu2 %v778_v8 }
 0x663   :  { %802 = vmatpush.msra.mxu2 %v777_v9 }
 0x665   :  { %803 = vmatpush.msra.mxu2 %v776_v10 }
 0x667   :  { %804 = vmatpush.msra.mxu2 %v775_v28 }
 0x669   :  { %805 = vmatpush.msra.mxu2 %v774_v11 }
 0x6c6   :  { %v669_v12 = vpop.xlane.xlu1 %668 }
 0x6c7   :  { %v673_v13 = vmul.f32 %v669_v12, %v2009_v43  ;;  %v1786_v12 = vld [vmem:[%s2569_s5 + $0x8] ss:$0 sm:$0xff] }
 0x6c8   :  { %v679_v15 = vpop.xlane.xlu2 %678 }
 0x6c9   :  { %v687_v16 = vmul.f32 %v673_v13, %v673_v13  ;;  %v683_v17 = vmul.f32 %v679_v15, %v2009_v43  ;;  %v685_v45 = vsub.f32 %v2177_v1, %v673_v13 }
 0x6cb   :  { %v689_v18 = vsub.f32 %v683_v17, %v687_v16 }
 0x6cd   :  { %v691_v19 = vadd.f32 1e-05, %v689_v18 }
 0x6cf   :  { %1839 = vrsqrt.f32 %v691_v19  ;;  %v672_v21 = vpop.xlane.xlu0 %671  ;;  %vm699_vm12 = vweird.f32 %v691_v19 }
 0x6d0   :  { %v674_v22 = vmul.f32 %v672_v21, %v2009_v43 }
 0x6d1   :  { %v682_v25 = vpop.xlane.xlu1 %681 }
 0x6d2   :  { %v688_v26 = vmul.f32 %v674_v22, %v674_v22  ;;  %v684_v27 = vmul.f32 %v682_v25, %v2009_v43  ;;  %v686_v59 = vsub.f32 %v2185_v7, %v674_v22 }
 0x6d4   :  { %v690_v30 = vsub.f32 %v684_v27, %v688_v26 }
 0x6d5   :  { %v1840_v32 = vpop.eup %1839 }
 0x6d6   :  { %v694_v33 = vmul.f32 %v1840_v32, %v691_v19  ;;  %v692_v34 = vadd.f32 1e-05, %v690_v30  ;;  %vm700_vm11 = vweird.f32 %v1840_v32 }
 0x6d7   :  { %vm701_vm13 = vmor %vm699_vm12, %vm700_vm11 }
 0x6d8   :  { %v695_v35 = vmul.f32 %v1840_v32, %v694_v33  ;;  %1841 = vrsqrt.f32 %v692_v34  ;;  %vm709_vm15 = vweird.f32 %v692_v34 }
 0x6da   :  { %v696_v36 = vmul.f32 0.5, %v695_v35 }
 0x6dc   :  { %v697_v37 = vsub.f32 1.5, %v696_v36 }
 0x6de   :  { %v1842_v39 = vpop.eup %1841  ;;  %v698_v44 = vmul.f32 %v1840_v32, %v697_v37  ;;  %v1787_v37 = vld [vmem:[%s2569_s5 + $0x9] ss:$0 sm:$0xff] }
 0x6df   :  { %v704_v47 = vmul.f32 %v1842_v39, %v692_v34  ;;  %vm710_vm14 = vweird.f32 %v1842_v39 }
 0x6e0   :  { %v702_v48 = vsel %vm701_vm13, %v1840_v32, %v698_v44  ;;  %vm711_vm1 = vmor %vm709_vm15, %vm710_vm14 }
 0x6e1   :  { %v713_v49 = vmul.f32 %v702_v48, %v685_v45  ;;  %v705_v52 = vmul.f32 %v1842_v39, %v704_v47 }
 0x6e3   :  { %v716_v54 = vmul.f32 %v1784_v46, %v713_v49  ;;  %v706_v55 = vmul.f32 0.5, %v705_v52 }
 0x6e5   :  { %v707_v57 = vsub.f32 1.5, %v706_v55  ;;  %v719_v56 = vadd.f32 %v1785_v53, %v716_v54 }
 0x6e7   :  { %v708_v58 = vmul.f32 %v1842_v39, %v707_v57  ;;  %1677 = vmatmul.msk.f32.vlgmr.msra.gmra.mxu1 %vm114_vm3, %v719_v56  ;;  %v1684_v57 = vld [vmem:[%s2566_s2 + $0x98] sm:$0xff] }
 0x6e8   :  { %v1698_v56 = vld [vmem:[%s2566_s2 + $0xd8] sm:$0xff]  ;;  %901 = vmatpush.msra.mxu3 %v1684_v57 }
 0x6e9   :  { %v712_v60 = vsel %vm711_vm1, %v1842_v39, %v708_v58  ;;  %961 = vmatpush.msrb.mxu1 %v1698_v56  ;;  %v1683_v58 = vld [vmem:[%s2566_s2 + $0x90] sm:$0xff] }
 0x6ea   :  { %v714_v61 = vmul.f32 %v712_v60, %v686_v59  ;;  %v1690_v59 = vld [vmem:[%s2566_s2 + $0xb0] sm:$0xff]  ;;  %902 = vmatpush.msra.mxu3 %v1683_v58 }
 0x6eb   :  { %v1697_v60 = vld [vmem:[%s2566_s2 + $0xd0] sm:$0xff] }
 0x6ec   :  { %v717_v63 = vmul.f32 %v1784_v46, %v714_v61  ;;  %962 = vmatpush.msrb.mxu1 %v1697_v60  ;;  %v1682_v61 = vld [vmem:[%s2566_s2 + $0x88] sm:$0xff] }
 0x6ed   :  { %903 = vmatpush.msra.mxu3 %v1682_v61 }
 0x6ee   :  { %v720_v0 = vadd.f32 %v1785_v53, %v717_v63  ;;  %v1689_v63 = vld [vmem:[%s2566_s2 + $0xa8] sm:$0xff] }
 0x6ef   :  { %904 = vmatpush.msra.mxu3 %v1681_v42 }
 0x6f0   :  { %1678 = vmatmul.msk.f32.gmra.mxu1 %vm114_vm3, %v720_v0  ;;  %v1696_v0 = vld [vmem:[%s2566_s2 + $0xc8] sm:$0xff] }
 0x6f1   :  { %963 = vmatpush.msrb.mxu1 %v1696_v0 }
 0x6f3   :  { %964 = vmatpush.msrb.mxu1 %v1695_v5 }
 0x764   :  { %v750_v13 = vpop.f32.mrf.mxu1 }
 0x765   :  { %v751_v14 = vadd.f32 %v1786_v12, %v750_v13 }
 0x767   :  { %v758_v15 = vmul.f32 0.044715, %v751_v14  ;;  %v756_v29 = vmul.f32 0.5, %v751_v14 }
 0x769   :  { %v760_v16 = vmul.f32 %v758_v15, %v751_v14 }
 0x76b   :  { %v762_v17 = vmul.f32 %v760_v16, %v751_v14 }
 0x76d   :  { %v753_v18 = vpop.f32.mrf.mxu1  ;;  %v764_v19 = vadd.f32 %v762_v17, %v751_v14 }
 0x76e   :  { %v754_v21 = vadd.f32 %v1786_v12, %v753_v18 }
 0x76f   :  { %v766_v22 = vmul.f32 0.7978846, %v764_v19 }
 0x770   :  { %v759_v23 = vmul.f32 0.044715, %v754_v21  ;;  %v757_v34 = vmul.f32 0.5, %v754_v21 }
 0x771   :  { %1843 = vtanh.f32 %v766_v22 }
 0x772   :  { %v761_v24 = vmul.f32 %v759_v23, %v754_v21 }
 0x774   :  { %v763_v25 = vmul.f32 %v761_v24, %v754_v21 }
 0x776   :  { %v765_v26 = vadd.f32 %v763_v25, %v754_v21 }
 0x777   :  { %v1844_v27 = vpop.eup %1843 }
 0x778   :  { %v770_v30 = vadd.f32 1.0, %v1844_v27  ;;  %v767_v31 = vmul.f32 0.7978846, %v765_v26  ;;  %v1788_v26 = vld [vmem:[%s2569_s5 + $0x10] ss:$0 sm:$0xff] }
 0x77a   :  { %v772_v32 = vmul.f32 %v770_v30, %v756_v29  ;;  %1845 = vtanh.f32 %v767_v31 }
 0x77c   :  { %806 = vmatmul.f32.vlgmr.msra.gmra.mxu2 %v772_v32  ;;  %v1789_v32 = vld [vmem:[%s2569_s5 + $0x11] ss:$0 sm:$0xff] }
 0x780   :  { %v1846_v33 = vpop.eup %1845 }
 0x781   :  { %v771_v35 = vadd.f32 1.0, %v1846_v33 }
 0x783   :  { %v773_v36 = vmul.f32 %v771_v35, %v757_v34 }
 0x785   :  { %809 = vmatmul.f32.gmra.mxu2 %v773_v36 }
 0x7ff   :  { %v807_v39 = vpop.f32.mrf.mxu2 }
 0x800   :  { %v813_v44 = vadd.f32 %v807_v39, %v2177_v1 }
 0x802   :  { %v2273_v45 = vadd.f32 %v1787_v37, %v813_v44 }
 0x804   :  { %v822_v46 = vsel %vm114_vm3, %v2273_v45, 0.0  ;;  %v830_v47 = vmul.f32 %v2273_v45, %v2273_v45 }
 0x805   :  { %823 = vadd.xlane.f32.xlu2 %v822_v46 }
 0x806   :  { %v832_v48 = vsel %vm114_vm3, %v830_v47, 0.0 }
 0x807   :  { %833 = vadd.xlane.f32.xlu0 %v832_v48 }
 0x808   :  { %v810_v49 = vpop.f32.mrf.mxu2 }
 0x809   :  { %v814_v52 = vadd.f32 %v810_v49, %v2185_v7  ;;  %v1691_v7 = vld [vmem:[%s2566_s2 + $0xb8] sm:$0xff] }
 0x80a   :  { %931 = vmatpush.msra.mxu0 %v1691_v7  ;;  %v1792_v7 = vld [vmem:[%s2569_s5 + $0x12] ss:$0 sm:$0xff] }
 0x80b   :  { %v2281_v53 = vadd.f32 %v1787_v37, %v814_v52 }
 0x80c   :  { %932 = vmatpush.msra.mxu0 %v1690_v59 }
 0x80d   :  { %v825_v1 = vsel %vm114_vm3, %v2281_v53, 0.0  ;;  %v831_v54 = vmul.f32 %v2281_v53, %v2281_v53 }
 0x80e   :  { %826 = vadd.xlane.f32.xlu1 %v825_v1  ;;  %933 = vmatpush.msra.mxu0 %v1689_v63  ;;  %v1791_v1 = vld [vmem:[%s2569_s5 + $0x14] ss:$0 sm:$0xff] }
 0x80f   :  { %v835_v55 = vsel %vm114_vm3, %v831_v54, 0.0  ;;  %v1790_v54 = vld [vmem:[%s2569_s5 + $0x13] ss:$0 sm:$0xff] }
 0x810   :  { %836 = vadd.xlane.f32.xlu2 %v835_v55  ;;  %934 = vmatpush.msra.mxu0 %v1688_v4 }
 0x878   :  { %v824_v50 = vpop.xlane.xlu2 %823 }
 0x879   :  { %v828_v2 = vmul.f32 %v824_v50, %v2009_v43 }
 0x87a   :  { %v834_v6 = vpop.xlane.xlu0 %833 }
 0x87b   :  { %v842_v20 = vmul.f32 %v828_v2, %v828_v2  ;;  %v838_v8 = vmul.f32 %v834_v6, %v2009_v43  ;;  %v840_v25 = vsub.f32 %v2273_v45, %v828_v2 }
 0x87d   :  { %v844_v9 = vsub.f32 %v838_v8, %v842_v20 }
 0x87f   :  { %v846_v10 = vadd.f32 1e-05, %v844_v9 }
 0x881   :  { %1847 = vrsqrt.f32 %v846_v10  ;;  %v827_v28 = vpop.xlane.xlu1 %826  ;;  %vm854_vm4 = vweird.f32 %v846_v10 }
 0x882   :  { %v829_v11 = vmul.f32 %v827_v28, %v2009_v43 }
 0x883   :  { %v837_v12 = vpop.xlane.xlu2 %836 }
 0x884   :  { %v843_v13 = vmul.f32 %v829_v11, %v829_v11  ;;  %v839_v14 = vmul.f32 %v837_v12, %v2009_v43  ;;  %v841_v39 = vsub.f32 %v2281_v53, %v829_v11 }
 0x886   :  { %v845_v15 = vsub.f32 %v839_v14, %v843_v13 }
 0x887   :  { %v1848_v16 = vpop.eup %1847 }
 0x888   :  { %v849_v17 = vmul.f32 %v1848_v16, %v846_v10  ;;  %v847_v18 = vadd.f32 1e-05, %v845_v15  ;;  %vm855_vm2 = vweird.f32 %v1848_v16 }
 0x889   :  { %vm856_vm5 = vmor %vm854_vm4, %vm855_vm2 }
 0x88a   :  { %v850_v19 = vmul.f32 %v1848_v16, %v849_v17  ;;  %1849 = vrsqrt.f32 %v847_v18  ;;  %vm864_vm7 = vweird.f32 %v847_v18 }
 0x88c   :  { %v851_v21 = vmul.f32 0.5, %v850_v19 }
 0x88e   :  { %v852_v22 = vsub.f32 1.5, %v851_v21 }
 0x890   :  { %v1850_v23 = vpop.eup %1849  ;;  %v853_v24 = vmul.f32 %v1848_v16, %v852_v22 }
 0x891   :  { %v859_v27 = vmul.f32 %v1850_v23, %v847_v18  ;;  %vm865_vm6 = vweird.f32 %v1850_v23 }
 0x892   :  { %v857_v29 = vsel %vm856_vm5, %v1848_v16, %v853_v24  ;;  %vm866_vm8 = vmor %vm864_vm7, %vm865_vm6 }
 0x893   :  { %v868_v30 = vmul.f32 %v857_v29, %v840_v25  ;;  %v860_v31 = vmul.f32 %v1850_v23, %v859_v27 }
 0x895   :  { %v871_v33 = vmul.f32 %v1788_v26, %v868_v30  ;;  %v861_v34 = vmul.f32 0.5, %v860_v31 }
 0x897   :  { %v862_v35 = vsub.f32 1.5, %v861_v34  ;;  %v874_v36 = vadd.f32 %v1789_v32, %v871_v33 }
 0x899   :  { %v863_v37 = vmul.f32 %v1850_v23, %v862_v35  ;;  %1686 = vmatmul.msk.f32.vlgmr.msra.gmra.mxu3 %vm114_vm3, %v874_v36  ;;  %1693 = vmatmul.msk.f32.vlgmr.msra.gmra.mxu0 %vm114_vm3, %v874_v36 }
 0x89a   :  { %1700 = vmatmul.msk.f32.vlgmr.msrb.gmra.mxu1 %vm114_vm3, %v874_v36 }
 0x89b   :  { %v867_v44 = vsel %vm866_vm8, %v1850_v23, %v863_v37 }
 0x89c   :  { %v869_v46 = vmul.f32 %v867_v44, %v841_v39 }
 0x89e   :  { %v872_v47 = vmul.f32 %v1788_v26, %v869_v46 }
 0x8a0   :  { %v875_v48 = vadd.f32 %v1789_v32, %v872_v47 }
 0x8a2   :  { %1687 = vmatmul.msk.f32.gmra.mxu3 %vm114_vm3, %v875_v48  ;;  %1694 = vmatmul.msk.f32.gmra.mxu0 %vm114_vm3, %v875_v48 }
 0x8a3   :  { %1701 = vmatmul.msk.f32.gmra.mxu1 %vm114_vm3, %v875_v48 }
 0x916   :  { %v936_v49 = vpop.f32.mrf.mxu0 }
 0x917   :  { %v966_v52 = vpop.f32.mrf.mxu1  ;;  %v937_v0 = vadd.f32 %v1790_v54, %v936_v49 }
 0x918   :  { %v967_v59 = vadd.f32 %v1791_v1, %v966_v52 }
 0x91a   :  { %v1086_v2 = vmul.f32 %v2069_v40, %v967_v59  ;;  %v1031_v42 = vmul.f32 %v2071_v41, %v967_v59  ;;  %v1199_v9 = vmul.f32 %v2065_v38, %v967_v59  ;;  %v1285_v10 = vmul.f32 %v2082_v51, %v967_v59 }
 0x91c   :  { %v906_v55 = vpop.f32.mrf.mxu3 }
 0x91d   :  { %v2355_v50 = vadd.f32 %v1792_v7, %v906_v55 }
 0x91f   :  { %v939_v57 = vpop.f32.mrf.mxu0  ;;  %v972_v6 = vmul.f32 %v2071_v41, %v2355_v50  ;;  %v1033_v20 = vmul.f32 %v2069_v40, %v2355_v50 }
 0x920   :  { %v940_v56 = vadd.f32 %v1790_v54, %v939_v57  ;;  %v969_v58 = vpop.f32.mrf.mxu1 }
 0x921   :  { %v970_v60 = vadd.f32 %v1791_v1, %v969_v58 }
 0x922   :  { %1702 = vmatpush.xpose.msk.msrb.mxu3 %vm114_vm3, %v940_v56  ;;  %1706 = vmatpush.xpose.msk.msrb.mxu0 %vm114_vm3, %v940_v56 }
 0x923   :  { %v1087_v61 = vmul.f32 %v2069_v40, %v970_v60  ;;  %v1032_v63 = vmul.f32 %v2071_v41, %v970_v60  ;;  %v1200_v4 = vmul.f32 %v2065_v38, %v970_v60  ;;  %v1286_v5 = vmul.f32 %v2082_v51, %v970_v60 }
 0x924   :  { %v1146_v51 = vmul.f32 %v2065_v38, %v2355_v50 }
 0x925   :  { %1108 = vmatpush.msra.mxu1 %v1087_v61  ;;  %1137 = vmatpush.msrb.mxu2 %v1032_v63  ;;  %v909_v8 = vpop.f32.mrf.mxu3 }
 0x926   :  { %1703 = vmatpush.xpose.msk.msrb.mxu3 %vm114_vm3, %v937_v0  ;;  %1707 = vmatpush.xpose.msk.msrb.mxu0 %vm114_vm3, %v937_v0  ;;  %v2373_v28 = vadd.f32 %v1792_v7, %v909_v8 }
 0x927   :  { %1109 = vmatpush.msra.mxu1 %v1086_v2  ;;  %1138 = vmatpush.msrb.mxu2 %v1031_v42 }
 0x928   :  { %v973_v11 = vmul.f32 %v2071_v41, %v2373_v28  ;;  %v1034_v12 = vmul.f32 %v2069_v40, %v2373_v28  ;;  %v1147_v13 = vmul.f32 %v2065_v38, %v2373_v28 }
 0x929   :  { %1720 = vmatpush.xpose.msk.msrb.mxu1 %vm114_vm3, %v940_v56  ;;  %1307 = vmatpush.msra.mxu2 %v1286_v5 }
 0x92a   :  { %1714 = vmatpush.xpose.msk.msra.mxu3 %vm114_vm3, %v940_v56  ;;  %1221 = vmatpush.msra.mxu0 %v1200_v4 }
 0x92b   :  { %1704 = vmatmul.msk.f32.vlgmr.msrb.gmra.mxu3 %vm114_vm3, %v972_v6  ;;  %1708 = vmatmul.msk.f32.vlgmr.msrb.gmra.mxu0 %vm114_vm3, %v1033_v20 }
 0x92c   :  { %1222 = vmatpush.msra.mxu0 %v1199_v9  ;;  %1308 = vmatpush.msra.mxu2 %v1285_v10 }
 0x92d   :  { %1721 = vmatpush.xpose.msk.msrb.mxu1 %vm114_vm3, %v937_v0 }
 0x92e   :  { %1715 = vmatpush.xpose.msk.msra.mxu3 %vm114_vm3, %v937_v0  ;;  %v1895_v0 = vld [vmem:[#allocation2 + $0x23] ss:$0 sm:$0xff] }
 0x92f   :  { %v1232_v2 = vmul.f32 %v1895_v0, %v2355_v50  ;;  %v1233_v20 = vmul.f32 %v1895_v0, %v2373_v28 }
 0x933   :  { %1705 = vmatmul.msk.f32.gmra.mxu3 %vm114_vm3, %v973_v11  ;;  %1709 = vmatmul.msk.f32.gmra.mxu0 %vm114_vm3, %v1034_v12 }
 0x93b   :  { %1716 = vmatmul.msk.f32.vlgmr.msra.gmra.mxu3 %vm114_vm3, %v1146_v51 }
 0x943   :  { %1717 = vmatmul.msk.f32.gmra.mxu3 %vm114_vm3, %v1147_v13 }
 0x9a8   :  { %v1058_v14 = vpop.f32.mrf.mxu0 }
 0x9a9   :  { %v1059_v41 = vadd.f32 %v1058_v14, %v2111_v62 }
 0x9ab   :  { %v1064_v15 = vsel %vm76_vm0, %v1059_v41, -inf }
 0x9ac   :  { %1065 = vmax.xlane.f32.xlu0 %v1064_v15  ;;  %v1896_v15 = vld [vmem:[#allocation2 + $0x30] sm:$0xff] }
 0x9ae   :  { %v1003_v40 = vpop.f32.mrf.mxu3 }
 0x9af   :  { %v1004_v21 = vadd.f32 %v1003_v40, %v2111_v62 }
 0x9b0   :  { %v1061_v16 = vpop.f32.mrf.mxu0 }
 0x9b1   :  { %v1062_v17 = vadd.f32 %v1061_v16, %v2115_v3  ;;  %v1009_v38 = vsel %vm76_vm0, %v1004_v21, -inf }
 0x9b3   :  { %v1067_v18 = vsel %vm76_vm0, %v1062_v17, -inf }
 0x9b4   :  { %1068 = vmax.xlane.f32.xlu1 %v1067_v18 }
 0x9b6   :  { %v1006_v19 = vpop.f32.mrf.mxu3 }
 0x9b7   :  { %v1007_v34 = vadd.f32 %v1006_v19, %v2115_v3 }
 0x9b9   :  { %v1012_v46 = vsel %vm76_vm0, %v1007_v34, -inf }
 0x9bc   :  { %1010 = vmax.xlane.f32.xlu1 %v1009_v38 }
 0x9be   :  { %v1171_v22 = vpop.f32.mrf.mxu3 }
 0x9bf   :  { %v1172_v23 = vadd.f32 %v1171_v22, %v2111_v62 }
 0x9c1   :  { %v1177_v24 = vsel %vm76_vm0, %v1172_v23, -inf }
 0x9c4   :  { %1178 = vmax.xlane.f32.xlu1 %v1177_v24 }
 0x9c6   :  { %v1174_v13 = vpop.f32.mrf.mxu3 }
 0x9c7   :  { %v1175_v28 = vadd.f32 %v1174_v13, %v2115_v3 }
 0x9c9   :  { %v1180_v16 = vsel %vm76_vm0, %v1175_v28, -inf }
 0xa1f   :  { %v1066_v25 = vpop.xlane.xlu0 %1065 }
 0xa20   :  { %v1070_v26 = vsub.f32 %v1059_v41, %v1066_v25 }
 0xa22   :  { %v1072_v27 = vmul.f32 1.442695, %v1070_v26 }
 0xa24   :  { %1851 = vpow2.f32 %v1072_v27 }
 0xa27   :  { %v1069_v29 = vpop.xlane.xlu1 %1068 }
 0xa28   :  { %v1071_v30 = vsub.f32 %v1062_v17, %v1069_v29 }
 0xa2a   :  { %v1852_v31 = vpop.eup %1851  ;;  %v1074_v32 = vmul.f32 1.442695, %v1071_v30 }
 0xa2b   :  { %v1076_v33 = vsel %vm76_vm0, %v1852_v31, 0.0 }
 0xa2c   :  { %1853 = vpow2.f32 %v1074_v32  ;;  %1077 = vadd.xlane.f32.xlu2 %v1076_v33 }
 0xa2f   :  { %v1011_v35 = vpop.xlane.xlu1 %1010 }
 0xa30   :  { %v1015_v36 = vsub.f32 %v1004_v21, %v1011_v35 }
 0xa32   :  { %v1854_v37 = vpop.eup %1853  ;;  %v1017_v39 = vmul.f32 1.442695, %v1015_v36 }
 0xa33   :  { %v1079_v44 = vsel %vm76_vm0, %v1854_v37, 0.0 }
 0xa34   :  { %1855 = vpow2.f32 %v1017_v39  ;;  %1080 = vadd.xlane.f32.xlu0 %v1079_v44  ;;  %1013 = vmax.xlane.f32.xlu2 %v1012_v46  ;;  %v1728_v39 = vld [vmem:[%s2566_s2 + $0xf0] sm:$0xff] }
 0xa37   :  { %v1179_v47 = vpop.xlane.xlu1 %1178 }
 0xa38   :  { %v1183_v48 = vsub.f32 %v1172_v23, %v1179_v47 }
 0xa3a   :  { %v1856_v49 = vpop.eup %1855  ;;  %v1185_v52 = vmul.f32 1.442695, %v1183_v48 }
 0xa3b   :  { %v1021_v1 = vsel %vm76_vm0, %v1856_v49, 0.0 }
 0xa3c   :  { %1857 = vpow2.f32 %v1185_v52  ;;  %1022 = vadd.xlane.f32.xlu1 %v1021_v1 }
 0xa42   :  { %v1858_v54 = vpop.eup %1857 }
 0xa43   :  { %v1189_v55 = vsel %vm76_vm0, %v1858_v54, 0.0 }
 0xa44   :  { %1190 = vadd.xlane.f32.xlu1 %v1189_v55 }
 0xa9f   :  { %v1078_v57 = vpop.xlane.xlu2 %1077 }
 0xaa0   :  { %1859 = vrcp.f32 %v1078_v57  ;;  %v1727_v57 = vld [vmem:[%s2566_s2 + $0xe8] sm:$0xff] }
 0xaa6   :  { %v1860_v7 = vpop.eup %1859 }
 0xaa7   :  { %v1084_v56 = vmul.f32 %v1860_v7, %v1852_v31  ;;  %v1081_v58 = vpop.xlane.xlu0 %1080  ;;  %v1014_v50 = vpop.xlane.xlu2 %1013  ;;  %v1726_v7 = vld [vmem:[%s2566_s2 + $0xe0] sm:$0xff] }
 0xaa8   :  { %1861 = vrcp.f32 %v1081_v58  ;;  %v1016_v12 = vsub.f32 %v1007_v34, %v1014_v50 }
 0xaa9   :  { %1710 = vmatmul.msk.f32.vlgmr.msra.gmra.mxu1 %vm76_vm0, %v1084_v56 }
 0xaaa   :  { %v1019_v14 = vmul.f32 1.442695, %v1016_v12 }
 0xaae   :  { %v1862_v59 = vpop.eup %1861 }
 0xaaf   :  { %v1023_v60 = vpop.xlane.xlu1 %1022  ;;  %v1085_v61 = vmul.f32 %v1862_v59, %v1854_v37  ;;  %v1729_v37 = vld [vmem:[%s2566_s2 + $0xf8] sm:$0xff] }
 0xab0   :  { %1863 = vrcp.f32 %v1023_v60  ;;  %1341 = vmatpush.msrb.mxu3 %v1729_v37 }
 0xab1   :  { %1711 = vmatmul.msk.f32.gmra.mxu1 %vm76_vm0, %v1085_v61 }
 0xab2   :  { %1342 = vmatpush.msrb.mxu3 %v1728_v39 }
 0xab4   :  { %1343 = vmatpush.msrb.mxu3 %v1727_v57 }
 0xab6   :  { %v1864_v63 = vpop.eup %1863  ;;  %1344 = vmatpush.msrb.mxu3 %v1726_v7 }
 0xab7   :  { %v1029_v42 = vmul.f32 %v1864_v63, %v1856_v49  ;;  %v1191_v4 = vpop.xlane.xlu1 %1190 }
 0xab8   :  { %1865 = vrcp.f32 %v1191_v4 }
 0xab9   :  { %1712 = vmatmul.msk.f32.vlgmr.msrb.gmra.mxu2 %vm76_vm0, %v1029_v42  ;;  %1722 = vmatmul.msk.f32.vlgmr.msrb.gmra.mxu1 %vm114_vm3, %v1232_v2  ;;  %1867 = vpow2.f32 %v1019_v14 }
 0xabe   :  { %v1866_v5 = vpop.eup %1865 }
 0xabf   :  { %v1197_v6 = vmul.f32 %v1866_v5, %v1858_v54  ;;  %v1868_v18 = vpop.eup %1867 }
 0xac1   :  { %1718 = vmatmul.msk.f32.vlgmr.msra.gmra.mxu0 %vm76_vm0, %v1197_v6  ;;  %1723 = vmatmul.msk.f32.gmra.mxu1 %vm114_vm3, %v1233_v20  ;;  %v1793_v20 = vld [vmem:[%s2569_s5 + $0x15] ss:$0 sm:$0xff] }
 0xb26   :  { %v2411_v8 = vpop.f32.mrf.mxu1 }
 0xb2e   :  { %v2413_v9 = vpop.f32.mrf.mxu1 }
 0xb36   :  { %v1257_v10 = vpop.f32.mrf.mxu1 }
 0xb37   :  { %v1258_v11 = vadd.f32 %v1257_v10, %v2111_v62  ;;  %v1024_v62 = vsel %vm76_vm0, %v1868_v18, 0.0 }
 0xb39   :  { %v1263_v51 = vsel %vm76_vm0, %v1258_v11, -inf }
 0xb3a   :  { %1264 = vmax.xlane.f32.xlu0 %v1263_v51 }
 0xb3c   :  { %v1140_v56 = vpop.f32.mrf.mxu2 }
 0xb3d   :  { %v1141_v59 = vadd.f32 %v1140_v56, %v2411_v8 }
 0xb3e   :  { %v1260_v41 = vpop.f32.mrf.mxu1  ;;  %v1224_v60 = vpop.f32.mrf.mxu0 }
 0xb3f   :  { %v1261_v40 = vadd.f32 %v1896_v15, %v1260_v41  ;;  %v1230_v61 = vadd.f32 %v1224_v60, %v1141_v59  ;;  %v1738_v15 = vld [vmem:[%s2567_s3 + $0x38] sm:$0xff] }
 0xb40   :  { %1439 = vmatpush.msrb.mxu0 %v1738_v15 }
 0xb41   :  { %v1266_v17 = vsel %vm76_vm0, %v1261_v40, -inf }
 0xb42   :  { %1181 = vmax.xlane.f32.xlu0 %v1180_v16  ;;  %1267 = vmax.xlane.f32.xlu2 %v1266_v17  ;;  %v1735_v17 = vld [vmem:[%s2567_s3 + $0x20] sm:$0xff] }
 0xb4a   :  { %1025 = vadd.xlane.f32.xlu2 %v1024_v62 }
 0xbad   :  { %v1265_v19 = vpop.xlane.xlu0 %1264 }
 0xbae   :  { %v1269_v21 = vsub.f32 %v1258_v11, %v1265_v19 }
 0xbb0   :  { %v1271_v38 = vmul.f32 1.442695, %v1269_v21 }
 0xbb2   :  { %1869 = vpow2.f32 %v1271_v38 }
 0xbb5   :  { %v1182_v22 = vpop.xlane.xlu0 %1181  ;;  %v1268_v3 = vpop.xlane.xlu2 %1267 }
 0xbb6   :  { %v1184_v23 = vsub.f32 %v1175_v28, %v1182_v22  ;;  %v1270_v24 = vsub.f32 %v1261_v40, %v1268_v3  ;;  %v1736_v40 = vld [vmem:[%s2567_s3 + $0x28] sm:$0xff] }
 0xbb8   :  { %v1870_v25 = vpop.eup %1869  ;;  %v1187_v26 = vmul.f32 1.442695, %v1184_v23  ;;  %v1273_v27 = vmul.f32 1.442695, %v1270_v24  ;;  %v1757_v24 = vld [vmem:[%s2568_s4 + $0xf8] sm:$0xff] }
 0xbb9   :  { %v1275_v29 = vsel %vm76_vm0, %v1870_v25, 0.0  ;;  %1485 = vmatpush.msra.mxu1 %v1757_v24 }
 0xbba   :  { %1871 = vpow2.f32 %v1187_v26  ;;  %1276 = vadd.xlane.f32.xlu0 %v1275_v29 }
 0xbbb   :  { %1873 = vpow2.f32 %v1273_v27 }
 0xbbd   :  { %v1026_v30 = vpop.xlane.xlu2 %1025 }
 0xbbe   :  { %1875 = vrcp.f32 %v1026_v30  ;;  %v1755_v30 = vld [vmem:[%s2568_s4 + $0xe8] sm:$0xff] }
 0xbc0   :  { %v1872_v31 = vpop.eup %1871 }
 0xbc1   :  { %v1874_v32 = vpop.eup %1873  ;;  %v1192_v33 = vsel %vm76_vm0, %v1872_v31, 0.0 }
 0xbc2   :  { %1193 = vadd.xlane.f32.xlu0 %v1192_v33  ;;  %v1278_v34 = vsel %vm76_vm0, %v1874_v32, 0.0 }
 0xbc3   :  { %1279 = vadd.xlane.f32.xlu2 %v1278_v34 }
 0xbc4   :  { %v1876_v35 = vpop.eup %1875 }
 0xbc5   :  { %v1030_v36 = vmul.f32 %v1876_v35, %v1868_v18 }
 0xbc7   :  { %1713 = vmatmul.msk.f32.gmra.mxu2 %vm76_vm0, %v1030_v36 }
 0xc2d   :  { %v1277_v44 = vpop.xlane.xlu0 %1276 }
 0xc2e   :  { %1877 = vrcp.f32 %v1277_v44 }
 0xc34   :  { %v1878_v46 = vpop.eup %1877 }
 0xc35   :  { %v1283_v47 = vmul.f32 %v1878_v46, %v1870_v25  ;;  %v1194_v48 = vpop.xlane.xlu0 %1193  ;;  %v1756_v25 = vld [vmem:[%s2568_s4 + $0xf0] sm:$0xff] }
 0xc36   :  { %1879 = vrcp.f32 %v1194_v48  ;;  %v1280_v49 = vpop.xlane.xlu2 %1279  ;;  %1486 = vmatpush.msra.mxu1 %v1756_v25  ;;  %v1794_v48 = vld [vmem:[%s2569_s5 + $0x16] ss:$0 sm:$0xff] }
 0xc37   :  { %1881 = vrcp.f32 %v1280_v49  ;;  %1724 = vmatmul.msk.f32.vlgmr.msra.gmra.mxu2 %vm76_vm0, %v1283_v47 }
 0xc38   :  { %1487 = vmatpush.msra.mxu1 %v1755_v30 }
 0xc3c   :  { %v1880_v52 = vpop.eup %1879 }
 0xc3d   :  { %v1882_v1 = vpop.eup %1881  ;;  %v1198_v54 = vmul.f32 %v1880_v52, %v1872_v31 }
 0xc3e   :  { %v1284_v55 = vmul.f32 %v1882_v1, %v1874_v32  ;;  %v1754_v32 = vld [vmem:[%s2568_s4 + $0xe0] sm:$0xff] }
 0xc3f   :  { %1719 = vmatmul.msk.f32.gmra.mxu0 %vm76_vm0, %v1198_v54  ;;  %1488 = vmatpush.msra.mxu1 %v1754_v32  ;;  %v1797_v32 = vld [vmem:[%s2569_s5 + $0x19] ss:$0 sm:$0xff] }
 0xc40   :  { %1725 = vmatmul.msk.f32.gmra.mxu2 %vm76_vm0, %v1284_v55  ;;  %v1795_v55 = vld [vmem:[%s2569_s5 + $0x17] ss:$0 sm:$0xff] }
 0xc4a   :  { %v1143_v58 = vpop.f32.mrf.mxu2 }
 0xc4b   :  { %v1144_v42 = vadd.f32 %v1143_v58, %v2413_v9 }
 0xcba   :  { %v1310_v63 = vpop.f32.mrf.mxu2 }
 0xcbb   :  { %v1316_v0 = vadd.f32 %v1310_v63, %v1230_v61 }
 0xcbc   :  { %v1227_v2 = vpop.f32.mrf.mxu0 }
 0xcbd   :  { %1730 = vmatmul.msk.f32.vlgmr.msrb.gmra.mxu3 %vm114_vm3, %v1316_v0  ;;  %v1231_v4 = vadd.f32 %v1227_v2, %v1144_v42  ;;  %v1753_v42 = vld [vmem:[%s2568_s4 + $0xd8] sm:$0xff] }
 0xcbe   :  { %1489 = vmatpush.msra.mxu1 %v1753_v42 }
 0xcc3   :  { %v1313_v5 = vpop.f32.mrf.mxu2 }
 0xcc4   :  { %v1317_v6 = vadd.f32 %v1313_v5, %v1231_v4  ;;  %v1752_v4 = vld [vmem:[%s2568_s4 + $0xd0] sm:$0xff]  ;;  %v1751_v5 = vld [vmem:[%s2568_s4 + $0xc8] sm:$0xff] }
 0xcc5   :  { %1490 = vmatpush.msra.mxu1 %v1752_v4  ;;  %v1594_v4 = vld [vmem:[#allocation2 + $0x40] sm:$0xff] }
 0xcc6   :  { %1731 = vmatmul.msk.f32.gmra.mxu3 %vm114_vm3, %v1317_v6  ;;  %v1750_v6 = vld [vmem:[%s2568_s4 + $0xc0] sm:$0xff] }
 0xcc7   :  { %1491 = vmatpush.msra.mxu1 %v1751_v5 }
 0xcc9   :  { %1492 = vmatpush.msra.mxu1 %v1750_v6 }
 0xd40   :  { %v1346_v50 = vpop.f32.mrf.mxu3 }
 0xd41   :  { %v1352_v8 = vadd.f32 %v1346_v50, %v2273_v45  ;;  %v1748_v50 = vld [vmem:[%s2568_s4 + $0xb0] sm:$0xff] }
 0xd43   :  { %v2448_v10 = vadd.f32 %v1793_v20, %v1352_v8  ;;  %v1747_v8 = vld [vmem:[%s2568_s4 + $0xa8] sm:$0xff] }
 0xd45   :  { %v1360_v11 = vsel %vm114_vm3, %v2448_v10, 0.0  ;;  %v1368_v9 = vmul.f32 %v2448_v10, %v2448_v10 }
 0xd46   :  { %1361 = vadd.xlane.f32.xlu1 %v1360_v11  ;;  %v1746_v11 = vld [vmem:[%s2568_s4 + $0xa0] sm:$0xff] }
 0xd47   :  { %v1370_v12 = vsel %vm114_vm3, %v1368_v9, 0.0  ;;  %v1745_v9 = vld [vmem:[%s2568_s4 + $0x98] sm:$0xff] }
 0xd48   :  { %1371 = vadd.xlane.f32.xlu2 %v1370_v12  ;;  %v1744_v12 = vld [vmem:[%s2568_s4 + $0x90] sm:$0xff] }
 0xd49   :  { %v1349_v51 = vpop.f32.mrf.mxu3 }
 0xd4a   :  { %v1353_v13 = vadd.f32 %v1349_v51, %v2281_v53  ;;  %v1737_v53 = vld [vmem:[%s2567_s3 + $0x30] sm:$0xff]  ;;  %v1743_v51 = vld [vmem:[%s2568_s4 + $0x88] sm:$0xff] }
 0xd4b   :  { %1440 = vmatpush.msrb.mxu0 %v1737_v53 }
 0xd4c   :  { %v2456_v14 = vadd.f32 %v1793_v20, %v1353_v13  ;;  %v1749_v20 = vld [vmem:[%s2568_s4 + $0xb8] sm:$0xff]  ;;  %v1742_v13 = vld [vmem:[%s2568_s4 + $0x80] sm:$0xff] }
 0xd4d   :  { %1441 = vmatpush.msrb.mxu0 %v1736_v40  ;;  %1493 = vmatpush.msra.mxu1 %v1749_v20 }
 0xd4e   :  { %v1363_v45 = vsel %vm114_vm3, %v2456_v14, 0.0  ;;  %v1369_v28 = vmul.f32 %v2456_v14, %v2456_v14 }
 0xd4f   :  { %1364 = vadd.xlane.f32.xlu0 %v1363_v45  ;;  %1442 = vmatpush.msrb.mxu0 %v1735_v17  ;;  %v1796_v45 = vld [vmem:[%s2569_s5 + $0x18] ss:$0 sm:$0xff] }
 0xd50   :  { %v1373_v41 = vsel %vm114_vm3, %v1369_v28, 0.0  ;;  %1494 = vmatpush.msra.mxu1 %v1748_v50 }
 0xd51   :  { %1374 = vadd.xlane.f32.xlu1 %v1373_v41 }
 0xd52   :  { %1495 = vmatpush.msra.mxu1 %v1747_v8 }
 0xd54   :  { %1496 = vmatpush.msra.mxu1 %v1746_v11 }
 0xd56   :  { %1497 = vmatpush.msra.mxu1 %v1745_v9 }
 0xd58   :  { %1498 = vmatpush.msra.mxu1 %v1744_v12 }
 0xd5a   :  { %1499 = vmatpush.msra.mxu1 %v1743_v51 }
 0xd5c   :  { %1500 = vmatpush.msra.mxu1 %v1742_v13 }
 0xdb9   :  { %v1362_v16 = vpop.xlane.xlu1 %1361 }
 0xdba   :  { %v1366_v18 = vmul.f32 %v1362_v16, %v2009_v43 }
 0xdbb   :  { %v1372_v62 = vpop.xlane.xlu2 %1371 }
 0xdbc   :  { %v1380_v19 = vmul.f32 %v1366_v18, %v1366_v18  ;;  %v1376_v21 = vmul.f32 %v1372_v62, %v2009_v43  ;;  %v1378_v47 = vsub.f32 %v2448_v10, %v1366_v18 }
 0xdbe   :  { %v1382_v38 = vsub.f32 %v1376_v21, %v1380_v19 }
 0xdc0   :  { %v1384_v22 = vadd.f32 1e-05, %v1382_v38 }
 0xdc2   :  { %1883 = vrsqrt.f32 %v1384_v22  ;;  %v1365_v3 = vpop.xlane.xlu0 %1364  ;;  %vm1392_vm10 = vweird.f32 %v1384_v22 }
 0xdc3   :  { %v1367_v23 = vmul.f32 %v1365_v3, %v2009_v43 }
 0xdc4   :  { %v1375_v26 = vpop.xlane.xlu1 %1374 }
 0xdc5   :  { %v1381_v27 = vmul.f32 %v1367_v23, %v1367_v23  ;;  %v1377_v29 = vmul.f32 %v1375_v26, %v2009_v43  ;;  %v1379_v60 = vsub.f32 %v2456_v14, %v1367_v23 }
 0xdc7   :  { %v1383_v31 = vsub.f32 %v1377_v29, %v1381_v27 }
 0xdc8   :  { %v1884_v33 = vpop.eup %1883 }
 0xdc9   :  { %v1387_v34 = vmul.f32 %v1884_v33, %v1384_v22  ;;  %v1385_v35 = vadd.f32 1e-05, %v1383_v31  ;;  %vm1393_vm9 = vweird.f32 %v1884_v33 }
 0xdca   :  { %vm1394_vm11 = vmor %vm1392_vm10, %vm1393_vm9 }
 0xdcb   :  { %v1388_v36 = vmul.f32 %v1884_v33, %v1387_v34  ;;  %1885 = vrsqrt.f32 %v1385_v35  ;;  %vm1402_vm13 = vweird.f32 %v1385_v35 }
 0xdcd   :  { %v1389_v37 = vmul.f32 0.5, %v1388_v36 }
 0xdcf   :  { %v1390_v39 = vsub.f32 1.5, %v1389_v37 }
 0xdd1   :  { %v1886_v44 = vpop.eup %1885  ;;  %v1391_v46 = vmul.f32 %v1884_v33, %v1390_v39 }
 0xdd2   :  { %v1397_v49 = vmul.f32 %v1886_v44, %v1385_v35  ;;  %vm1403_vm12 = vweird.f32 %v1886_v44 }
 0xdd3   :  { %v1395_v52 = vsel %vm1394_vm11, %v1884_v33, %v1391_v46  ;;  %vm1404_vm14 = vmor %vm1402_vm13, %vm1403_vm12 }
 0xdd4   :  { %v1406_v1 = vmul.f32 %v1395_v52, %v1378_v47  ;;  %v1398_v54 = vmul.f32 %v1886_v44, %v1397_v49 }
 0xdd6   :  { %v1409_v57 = vmul.f32 %v1794_v48, %v1406_v1  ;;  %v1399_v7 = vmul.f32 0.5, %v1398_v54 }
 0xdd8   :  { %v1400_v56 = vsub.f32 1.5, %v1399_v7  ;;  %v1412_v58 = vadd.f32 %v1795_v55, %v1409_v57 }
 0xdda   :  { %v1401_v59 = vmul.f32 %v1886_v44, %v1400_v56  ;;  %1740 = vmatmul.msk.f32.vlgmr.msrb.gmra.mxu0 %vm114_vm3, %v1412_v58 }
 0xddc   :  { %v1405_v61 = vsel %vm1404_vm14, %v1886_v44, %v1401_v59 }
 0xddd   :  { %v1407_v63 = vmul.f32 %v1405_v61, %v1379_v60  ;;  %v1597_v60 = vld [vmem:[#allocation2 + $0x58] sm:$0xff]  ;;  %v1596_v61 = vld [vmem:[#allocation2 + $0x50] sm:$0xff] }
 0xdde   :  { %1615 = vmatpush.msra.mxu3 %v1597_v60 }
 0xddf   :  { %v1410_v0 = vmul.f32 %v1794_v48, %v1407_v63 }
 0xde0   :  { %1616 = vmatpush.msra.mxu3 %v1596_v61 }
 0xde1   :  { %v1413_v2 = vadd.f32 %v1795_v55, %v1410_v0 }
 0xde3   :  { %1741 = vmatmul.msk.f32.gmra.mxu0 %vm114_vm3, %v1413_v2  ;;  %v1595_v2 = vld [vmem:[#allocation2 + $0x48] sm:$0xff] }
 0xde4   :  { %1617 = vmatpush.msra.mxu3 %v1595_v2 }
 0xde6   :  { %1618 = vmatpush.msra.mxu3 %v1594_v4 }
 0xe57   :  { %v1444_v28 = vpop.f32.mrf.mxu0 }
 0xe58   :  { %v1445_v41 = vadd.f32 %v1796_v45, %v1444_v28 }
 0xe5a   :  { %v1452_v15 = vmul.f32 0.044715, %v1445_v41  ;;  %v1450_v23 = vmul.f32 0.5, %v1445_v41 }
 0xe5c   :  { %v1454_v53 = vmul.f32 %v1452_v15, %v1445_v41 }
 0xe5e   :  { %v1456_v40 = vmul.f32 %v1454_v53, %v1445_v41  ;;  %v1799_v53 = vld [vmem:[#allocation2 + $0x3c] ss:$0 sm:$0xff] }
 0xe60   :  { %v1447_v16 = vpop.f32.mrf.mxu0  ;;  %v1458_v17 = vadd.f32 %v1456_v40, %v1445_v41 }
 0xe61   :  { %v1448_v18 = vadd.f32 %v1796_v45, %v1447_v16  ;;  %v1798_v45 = vld [vmem:[#allocation2 + $0x3b] ss:$0 sm:$0xff] }
 0xe62   :  { %v1460_v62 = vmul.f32 0.7978846, %v1458_v17 }
 0xe63   :  { %v1453_v19 = vmul.f32 0.044715, %v1448_v18  ;;  %v1451_v29 = vmul.f32 0.5, %v1448_v18 }
 0xe64   :  { %1887 = vtanh.f32 %v1460_v62 }
 0xe65   :  { %v1455_v21 = vmul.f32 %v1453_v19, %v1448_v18 }
 0xe67   :  { %v1457_v38 = vmul.f32 %v1455_v21, %v1448_v18 }
 0xe69   :  { %v1459_v22 = vadd.f32 %v1457_v38, %v1448_v18 }
 0xe6a   :  { %v1888_v3 = vpop.eup %1887 }
 0xe6b   :  { %v1464_v24 = vadd.f32 1.0, %v1888_v3  ;;  %v1461_v25 = vmul.f32 0.7978846, %v1459_v22  ;;  %v1570_v3 = vld [vmem:[#allocation2 + $0x38] sm:$0x3] }
 0xe6d   :  { %v1466_v26 = vmul.f32 %v1464_v24, %v1450_v23  ;;  %1889 = vtanh.f32 %v1461_v25  ;;  %v1800_v24 = vld [vmem:[#allocation2 + $0x3d] ss:$0 sm:$0xff] }
 0xe6f   :  { %1501 = vmatmul.f32.vlgmr.msra.gmra.mxu1 %v1466_v26 }
 0xe73   :  { %v1890_v27 = vpop.eup %1889 }
 0xe74   :  { %v1465_v30 = vadd.f32 1.0, %v1890_v27 }
 0xe76   :  { %v1467_v31 = vmul.f32 %v1465_v30, %v1451_v29 }
 0xe78   :  { %1504 = vmatmul.f32.gmra.mxu1 %v1467_v31 }
 0xeec   :  { %v1502_v33 = vpop.f32.mrf.mxu1 }
 0xeed   :  { %v1508_v34 = vadd.f32 %v1502_v33, %v2448_v10 }
 0xeef   :  { %v2544_v35 = vadd.f32 %v1797_v32, %v1508_v34 }
 0xef1   :  { %v1516_v36 = vsel %vm114_vm3, %v2544_v35, 0.0  ;;  %v1524_v10 = vmul.f32 %v2544_v35, %v2544_v35 }
 0xef2   :  { %1517 = vadd.xlane.f32.xlu0 %v1516_v36 }
 0xef3   :  { %v1526_v49 = vsel %vm114_vm3, %v1524_v10, 0.0 }
 0xef5   :  { %v1505_v37 = vpop.f32.mrf.mxu1 }
 0xef6   :  { %v1509_v39 = vadd.f32 %v1505_v37, %v2456_v14 }
 0xef8   :  { %v1513_v44 = vadd.f32 %v1797_v32, %v1509_v39 }
 0xefa   :  { %v1519_v46 = vsel %vm114_vm3, %v1513_v44, 0.0  ;;  %v1525_v47 = vmul.f32 %v1513_v44, %v1513_v44 }
 0xefb   :  { %1520 = vadd.xlane.f32.xlu2 %v1519_v46 }
 0xefc   :  { %v1529_v48 = vsel %vm114_vm3, %v1525_v47, 0.0 }
 0xefd   :  { %1530 = vadd.xlane.f32.xlu1 %v1529_v48 }
 0xf03   :  { %1527 = vadd.xlane.f32.xlu2 %v1526_v49 }
 0xf65   :  { %v1518_v54 = vpop.xlane.xlu0 %1517 }
 0xf66   :  { %v1522_v7 = vmul.f32 %v1518_v54, %v2009_v43 }
 0xf68   :  { %v1536_v63 = vmul.f32 %v1522_v7, %v1522_v7  ;;  %v1534_v18 = vsub.f32 %v2544_v35, %v1522_v7 }
 0xf6e   :  { %v1521_v52 = vpop.xlane.xlu2 %1520 }
 0xf6f   :  { %v1523_v1 = vmul.f32 %v1521_v52, %v2009_v43 }
 0xf70   :  { %v1531_v55 = vpop.xlane.xlu1 %1530 }
 0xf71   :  { %v1537_v14 = vmul.f32 %v1523_v1, %v1523_v1  ;;  %v1533_v57 = vmul.f32 %v1531_v55, %v2009_v43  ;;  %v1535_v13 = vsub.f32 %v1513_v44, %v1523_v1 }
 0xf73   :  { %v1539_v56 = vsub.f32 %v1533_v57, %v1537_v14 }
 0xf75   :  { %v1541_v58 = vadd.f32 1e-05, %v1539_v56 }
 0xf76   :  { %v1528_v59 = vpop.xlane.xlu2 %1527 }
 0xf77   :  { %1891 = vrsqrt.f32 %v1541_v58  ;;  %v1532_v0 = vmul.f32 %v1528_v59, %v2009_v43  ;;  %vm1558_vm1 = vweird.f32 %v1541_v58 }
 0xf79   :  { %v1538_v42 = vsub.f32 %v1532_v0, %v1536_v63 }
 0xf7b   :  { %v1540_v5 = vadd.f32 1e-05, %v1538_v42 }
 0xf7d   :  { %v1892_v6 = vpop.eup %1891  ;;  %1893 = vrsqrt.f32 %v1540_v5  ;;  %vm1548_vm5 = vweird.f32 %v1540_v5 }
 0xf7e   :  { %v1553_v20 = vmul.f32 %v1892_v6, %v1541_v58  ;;  %vm1559_vm15 = vweird.f32 %v1892_v6 }
 0xf7f   :  { %vm1560_vm2 = vmor %vm1558_vm1, %vm1559_vm15 }
 0xf80   :  { %v1554_v50 = vmul.f32 %v1892_v6, %v1553_v20 }
 0xf82   :  { %v1555_v8 = vmul.f32 0.5, %v1554_v50 }
 0xf83   :  { %v1894_v11 = vpop.eup %1893 }
 0xf84   :  { %v1556_v9 = vsub.f32 1.5, %v1555_v8  ;;  %v1543_v12 = vmul.f32 %v1894_v11, %v1540_v5  ;;  %vm1549_vm4 = vweird.f32 %v1894_v11 }
 0xf85   :  { %vm1550_vm6 = vmor %vm1548_vm5, %vm1549_vm4 }
 0xf86   :  { %v1557_v51 = vmul.f32 %v1892_v6, %v1556_v9  ;;  %v1544_v43 = vmul.f32 %v1894_v11, %v1543_v12 }
 0xf88   :  { %v1561_v28 = vsel %vm1560_vm2, %v1892_v6, %v1557_v51  ;;  %v1545_v41 = vmul.f32 0.5, %v1544_v43 }
 0xf89   :  { %v1563_v15 = vmul.f32 %v1561_v28, %v1535_v13 }
 0xf8a   :  { %v1546_v40 = vsub.f32 1.5, %v1545_v41 }
 0xf8b   :  { %v1566_v16 = vmul.f32 %v1798_v45, %v1563_v15 }
 0xf8c   :  { %v1547_v17 = vmul.f32 %v1894_v11, %v1546_v40 }
 0xf8d   :  { %v1569_v62 = vadd.f32 %v1799_v53, %v1566_v16 }
 0xf8e   :  { %v1551_v19 = vsel %vm1550_vm6, %v1894_v11, %v1547_v17 }
 0xf8f   :  { %1588 = vmatpush.msrb.mxu2 %v1569_v62  ;;  %v1562_v21 = vmul.f32 %v1551_v19, %v1534_v18 }
 0xf91   :  { %v1565_v38 = vmul.f32 %v1798_v45, %v1562_v21 }
 0xf93   :  { %v1568_v22 = vadd.f32 %v1799_v53, %v1565_v38 }
 0xf95   :  { %1589 = vmatpush.msrb.mxu2 %v1568_v22 }
 0xf96   :  { %1759 = vmatmul.msk.f32.vlgmr.msrb.gmra.mxu2 %vm76_vm0, %v1570_v3 }
0x1019   :  { %v1591_v23 = vpop.f32.mrf.mxu2 }
0x101a   :  { %1760 = vmatmul.msk.f32.vlgmr.msra.gmra.mxu3 %vm114_vm3, %v1591_v23 }
0x109d   :  { %v1620_v25 = vpop.f32.mrf.mxu3 }
0x109e   :  { %v1621_v26 = vadd.f32 %v1800_v24, %v1620_v25 }
0x10a0   :  { %1623 = vst [vmem:[%s2571_s7] sm:$0x3] %v1621_v26 }
0x10a1   :  { %1628 = vsyncpa [#allocation3], 1 }

</bundles_post_ra>
